<compile_context>
chip_gen: v6e
topology: v6e:2x2x1
jax: 0.10.0
libtpu: 0.0.40
codegen_flags: <defaults>
</compile_context>

<pallas_src>
import jax
import jax.numpy as jnp
from jax.experimental import pallas as pl
from jax.experimental.pallas import tpu as pltpu


# ---------------- Pallas kernels ----------------

def _conv_stats_kernel(x_ref, w_ref, conv_ref, stats_ref):
    # x_ref:    (1, H+2, W+2, Cin)  bf16 padded image (read once, no upcast)
    # w_ref:    (9*Cin, tC)         bf16 tap-major weights
    # conv_ref: (1, tC, HW)         bf16 lane-dense conv output (channel-major)
    # stats_ref:(1, 2, tC)          f32  [row 0: sum over HW, row 1: centered SSQ]
    _, HP, WP, Cin = x_ref.shape
    H, W = HP - 2, WP - 2
    HW = H * W

    x = x_ref[0]                                          # bf16, stays bf16
    taps = []
    for dy in range(3):                                   # statically unrolled
        for dx in range(3):
            taps.append(x[dy:dy + H, dx:dx + W, :].reshape(HW, Cin))
    slab = jnp.concatenate(taps, axis=1)                  # (HW, 9*Cin) bf16, in VMEM

    # Single fused MXU matmul, K = 9*Cin, f32 accumulation.
    acc = jnp.dot(slab, w_ref[...], preferred_element_type=jnp.float32)  # (HW, tC)

    # Per-image statistics from the f32 accumulator (centered -> no cancellation).
    s = jnp.sum(acc, axis=0, keepdims=True)               # (1, tC)
    mu = s * (1.0 / HW)
    m2 = jnp.sum(jnp.square(acc - mu), axis=0, keepdims=True)   # (1, tC)
    stats_ref[0] = jnp.concatenate([s, m2], axis=0)       # (2, tC), lane-dense

    # Channel-major, lane-dense store.  acc.T is cheap for small Cout; for very
    # large Cout prefer emitting the matmul channel-major instead (see review).
    conv_ref[0] = acc.T.astype(conv_ref.dtype)            # (tC, HW) bf16


def _bn_relu_kernel(x_ref, scale_ref, shift_ref, o_ref):
    # x_ref: (1, Cout, t_hw) bf16 ; scale/shift: (Cout, 1) f32 ; o_ref f32
    y = x_ref[0].astype(jnp.float32) * scale_ref[...] + shift_ref[...]
    o_ref[0] = jnp.maximum(y, 0.0)


# ---------------- tiling / VMEM helpers ----------------

def _pick_cout_tile(cout):
    # Tile Cout only when it is large and lane-aligned; otherwise a full-dim
    # block is legal under the (8,128) rule and simplest.
    if cout <= 256 or cout % 128 != 0:
        return cout
    for cand in (256, 128):
        if cout % cand == 0:
            return cand
    return cout


def _pick_hw_band(hw, target=32 * 1024):
    # Band the lane (HW) axis of the BN+ReLU pass into few-MiB blocks.
    if hw <= target or hw % 128 != 0:
        return hw
    band = (target // 128) * 128
    while band >= 128:
        if hw % band == 0:
            return band
        band -= 128
    return hw


def _vmem_limit_bytes():
    # ~3/4 of physical VMEM: ~96 MiB on v5e/v6e (128 MiB), ~48 MiB on v7x (64 MiB).
    try:
        cap = pltpu.get_tpu_info().vmem_capacity_bytes
    except Exception:
        cap = 64 * 1024 * 1024
    return int(min(100 * 1024 * 1024, max(32 * 1024 * 1024, (cap * 3) // 4)))


# ---------------- wrapper ----------------

def conv_block_forward(x_nchw, w_oihw, bias, gamma, beta, eps=1e-5):
    """relu(batchnorm(conv2d(x))) with BN using batch statistics (train mode).

    `bias` is accepted for API parity with nn.Conv2d but never added: with
    batch-statistics BN the conv bias cancels exactly (the batch mean absorbs
    it), so dropping it is a zero-error optimization.
    """
    del bias
    N, Cin, H, W = x_nchw.shape
    Cout, _, KH, KW = w_oihw.shape
    assert (KH, KW) == (3, 3)
    HW = H * W

    # NCHW -> padded NHWC in bf16 (read exactly once per Cout tile; no HBM im2col).
    # TODO(synk): the transpose+pad+cast is one extra XLA pass over the input;
    # in-kernel halo masking would remove it but is not implemented here.
    x = jnp.transpose(x_nchw, (0, 2, 3, 1)).astype(jnp.bfloat16)
    xp = jnp.pad(x, ((0, 0), (1, 1), (1, 1), (0, 0)))
    # (Cout, Cin, 3, 3) -> (kh, kw, Cin, Cout) -> (9*Cin, Cout), tap-major.
    w9 = jnp.transpose(w_oihw, (2, 3, 1, 0)).reshape(9 * Cin, Cout).astype(jnp.bfloat16)

    cparams = pltpu.CompilerParams(
        dimension_semantics=("parallel", "parallel"),   # shard across TCs (v7x megacore)
        vmem_limit_bytes=_vmem_limit_bytes(),
    )

    # ---- Kernel 1: fused 3x3 conv (single K=9*Cin matmul) + per-image BN stats ----
    tC = _pick_cout_tile(Cout)
    n_ct = Cout // tC
    conv_t, stats = pl.pallas_call(
        _conv_stats_kernel,
        out_shape=(
            jax.ShapeDtypeStruct((N, Cout, HW), jnp.bfloat16),
            jax.ShapeDtypeStruct((N, 2, Cout), jnp.float32),
        ),
        grid_spec=pltpu.PrefetchScalarGridSpec(
            num_scalar_prefetch=0,
            grid=(N, n_ct),
            in_specs=[
                pl.BlockSpec((1, H + 2, W + 2, Cin), lambda n, c: (n, 0, 0, 0)),
                pl.BlockSpec((9 * Cin, tC), lambda n, c: (0, c)),
            ],
            out_specs=(
                pl.BlockSpec((1, tC, HW), lambda n, c: (n, c, 0)),
                pl.BlockSpec((1, 2, tC), lambda n, c: (n, 0, c)),
            ),
        ),
        compiler_params=cparams,
    )(xp, w9)

    # ---- tiny (N, Cout) combine in XLA: Chan's parallel variance (batch stats) ----
    hw_f = jnp.float32(HW)
    total = jnp.float32(N * HW)
    s_n = stats[:, 0, :]                                          # (N, Cout) per-image sums
    m2_n = stats[:, 1, :]                                         # (N, Cout) centered SSQ
    mean = jnp.sum(s_n, axis=0) / total                           # (Cout,)
    mu_n = s_n / hw_f
    m2 = jnp.sum(m2_n, axis=0) + hw_f * jnp.sum(jnp.square(mu_n - mean[None, :]), axis=0)
    var = jnp.maximum(m2 / total, 0.0)                            # biased, as BN training uses
    scale = gamma.astype(jnp.float32) / jnp.sqrt(var + eps)       # (Cout,)
    shift = beta.astype(jnp.float32) - mean * scale               # (Cout,)

    # ---- Kernel 2: folded BN affine + ReLU over lane-dense bf16 slab, HW-banded ----
    band = _pick_hw_band(HW)
    n_hb = HW // band
    y = pl.pallas_call(
        _bn_relu_kernel,
        out_shape=jax.ShapeDtypeStruct((N, Cout, HW), jnp.float32),
        grid_spec=pltpu.PrefetchScalarGridSpec(
            num_scalar_prefetch=0,
            grid=(N, n_hb),
            in_specs=[
                pl.BlockSpec((1, Cout, band), lambda n, h: (n, 0, h)),
                pl.BlockSpec((Cout, 1), lambda n, h: (0, 0)),
                pl.BlockSpec((Cout, 1), lambda n, h: (0, 0)),
            ],
            out_specs=pl.BlockSpec((1, Cout, band), lambda n, h: (n, 0, h)),
        ),
        compiler_params=cparams,
    )(conv_t, scale.reshape(Cout, 1), shift.reshape(Cout, 1))

    # (N, Cout, H*W) is already channel-major -> plain reshape gives NCHW.
    return y.reshape(N, Cout, H, W)


# ---------------- pure-JAX references for sanity checking ----------------

def conv_block_ref(x, w, b, gamma, beta, eps=1e-5, conv_dtype=jnp.float32,
                   bn_input_dtype=None):
    conv = jax.lax.conv_general_dilated(
        x.astype(conv_dtype), w.astype(conv_dtype),
        window_strides=(1, 1), padding=((1, 1), (1, 1)),
        dimension_numbers=("NCHW", "OIHW", "NCHW"),
        preferred_element_type=jnp.float32,
    ) + b.reshape(1, -1, 1, 1)
    mean = conv.mean(axis=(0, 2, 3), keepdims=True)
    var = ((conv - mean) ** 2).mean(axis=(0, 2, 3), keepdims=True)
    scale = gamma.reshape(1, -1, 1, 1) / jnp.sqrt(var + eps)
    shift = beta.reshape(1, -1, 1, 1) - mean * scale
    bn_in = conv if bn_input_dtype is None else conv.astype(bn_input_dtype).astype(jnp.float32)
    return jnp.maximum(bn_in * scale + shift, 0.0)


if __name__ == "__main__":
    # small shapes consistent with ConvBlock(in_channels=4, out_channels=8)
    N, Cin, Cout, H, W = 2, 4, 8, 16, 16

    key = jax.random.PRNGKey(0)
    kx, kw, kb, kg, kbeta = jax.random.split(key, 5)

    x = jax.random.normal(kx, (N, Cin, H, W), dtype=jnp.float32)
    w = jax.random.normal(kw, (Cout, Cin, 3, 3), dtype=jnp.float32) * 0.1
    b = jax.random.normal(kb, (Cout,), dtype=jnp.float32) * 0.1
    gamma = jnp.ones((Cout,), jnp.float32) + 0.05 * jax.random.normal(kg, (Cout,))
    beta = 0.05 * jax.random.normal(kbeta, (Cout,), dtype=jnp.float32)

    out = jax.block_until_ready(conv_block_forward(x, w, b, gamma, beta))
    assert out.shape == (N, Cout, H, W)

    # tight check vs a reference with matching numerics: bf16 conv operands,
    # f32 stats, BN applied to the bf16-rounded conv intermediate, no bias
    # (the bias is exactly absorbed by the batch mean in our pipeline).
    ref_matched = conv_block_ref(x, w, jnp.zeros_like(b), gamma, beta,
                                 conv_dtype=jnp.bfloat16,
                                 bn_input_dtype=jnp.bfloat16)
    assert jnp.allclose(out, ref_matched, atol=5e-3, rtol=5e-3), \
        "mismatch vs matched-precision JAX reference"

    # loose check vs full-f32 module semantics (bias included; cancels under BN)
    ref_f32 = conv_block_ref(x, w, b, gamma, beta, conv_dtype=jnp.float32)
    assert jnp.allclose(out, ref_f32, atol=5e-2, rtol=5e-2), \
        "mismatch vs f32 JAX reference"

    print("KERNEL_OK")
</pallas_src>

<mosaic_0001>
module attributes {stable_mosaic.version = 11 : i64} {
  func.func @_conv_stats_kernel(%arg0: i32, %arg1: i32, %arg2: memref<1x18x18x4xbf16, #tpu.memory_space<vmem>>, %arg3: memref<36x8xbf16, #tpu.memory_space<vmem>>, %arg4: memref<1x8x256xbf16, #tpu.memory_space<vmem>>, %arg5: memref<1x2x8xf32, #tpu.memory_space<vmem>>) attributes {dimension_semantics = [#tpu.dimension_semantics<parallel>, #tpu.dimension_semantics<parallel>], iteration_bounds = array<i64: 2, 1>, scalar_prefetch = 0 : i64, scratch_operands = 0 : i64, tpu.core_type = #tpu.core_type<tc>, window_params = [{transform_indices = @transform_0, window_bounds = array<i64: 1, 18, 18, 4>}, {transform_indices = @transform_1, window_bounds = array<i64: 36, 8>}, {transform_indices = @transform_2, window_bounds = array<i64: 1, 8, 256>}, {transform_indices = @transform_3, window_bounds = array<i64: 1, 2, 8>}]} {
    %c0 = arith.constant 0 : index
    %c0_0 = arith.constant 0 : index
    %c0_1 = arith.constant 0 : index
    %c0_2 = arith.constant 0 : index
    %0 = vector.load %arg2[%c0, %c0_0, %c0_1, %c0_2] : memref<1x18x18x4xbf16, #tpu.memory_space<vmem>>, vector<1x18x18x4xbf16>
    %1 = vector.shape_cast %0 : vector<1x18x18x4xbf16> to vector<18x18x4xbf16>
    %2 = vector.extract_strided_slice %1 {offsets = [0, 0, 0], sizes = [16, 16, 4], strides = [1, 1, 1]} : vector<18x18x4xbf16> to vector<16x16x4xbf16>
    %3 = vector.shape_cast %2 : vector<16x16x4xbf16> to vector<256x4xbf16>
    %4 = vector.extract_strided_slice %1 {offsets = [0, 1, 0], sizes = [16, 16, 4], strides = [1, 1, 1]} : vector<18x18x4xbf16> to vector<16x16x4xbf16>
    %5 = vector.shape_cast %4 : vector<16x16x4xbf16> to vector<256x4xbf16>
    %6 = vector.extract_strided_slice %1 {offsets = [0, 2, 0], sizes = [16, 16, 4], strides = [1, 1, 1]} : vector<18x18x4xbf16> to vector<16x16x4xbf16>
    %7 = vector.shape_cast %6 : vector<16x16x4xbf16> to vector<256x4xbf16>
    %8 = vector.extract_strided_slice %1 {offsets = [1, 0, 0], sizes = [16, 16, 4], strides = [1, 1, 1]} : vector<18x18x4xbf16> to vector<16x16x4xbf16>
    %9 = vector.shape_cast %8 : vector<16x16x4xbf16> to vector<256x4xbf16>
    %10 = vector.extract_strided_slice %1 {offsets = [1, 1, 0], sizes = [16, 16, 4], strides = [1, 1, 1]} : vector<18x18x4xbf16> to vector<16x16x4xbf16>
    %11 = vector.shape_cast %10 : vector<16x16x4xbf16> to vector<256x4xbf16>
    %12 = vector.extract_strided_slice %1 {offsets = [1, 2, 0], sizes = [16, 16, 4], strides = [1, 1, 1]} : vector<18x18x4xbf16> to vector<16x16x4xbf16>
    %13 = vector.shape_cast %12 : vector<16x16x4xbf16> to vector<256x4xbf16>
    %14 = vector.extract_strided_slice %1 {offsets = [2, 0, 0], sizes = [16, 16, 4], strides = [1, 1, 1]} : vector<18x18x4xbf16> to vector<16x16x4xbf16>
    %15 = vector.shape_cast %14 : vector<16x16x4xbf16> to vector<256x4xbf16>
    %16 = vector.extract_strided_slice %1 {offsets = [2, 1, 0], sizes = [16, 16, 4], strides = [1, 1, 1]} : vector<18x18x4xbf16> to vector<16x16x4xbf16>
    %17 = vector.shape_cast %16 : vector<16x16x4xbf16> to vector<256x4xbf16>
    %18 = vector.extract_strided_slice %1 {offsets = [2, 2, 0], sizes = [16, 16, 4], strides = [1, 1, 1]} : vector<18x18x4xbf16> to vector<16x16x4xbf16>
    %19 = vector.shape_cast %18 : vector<16x16x4xbf16> to vector<256x4xbf16>
    %20 = tpu.concatenate %3, %5, %7, %9, %11, %13, %15, %17, %19 in 1 : vector<256x4xbf16>, vector<256x4xbf16>, vector<256x4xbf16>, vector<256x4xbf16>, vector<256x4xbf16>, vector<256x4xbf16>, vector<256x4xbf16>, vector<256x4xbf16>, vector<256x4xbf16> -> vector<256x36xbf16>
    %c0_3 = arith.constant 0 : index
    %c0_4 = arith.constant 0 : index
    %21 = vector.load %arg3[%c0_3, %c0_4] : memref<36x8xbf16, #tpu.memory_space<vmem>>, vector<36x8xbf16>
    %cst = arith.constant dense<0.000000e+00> : vector<256x8xf32>
    %22 = tpu.matmul %20, %21, %cst {dimension_numbers = #tpu.dot_dimension_numbers<[1], [0], [0], [1], [0, 0, 1, 1], [], []>} : vector<256x36xbf16>, vector<36x8xbf16>, vector<256x8xf32> -> vector<256x8xf32>
    %cst_5 = arith.constant dense<0.000000e+00> : vector<8xf32>
    %23 = vector.multi_reduction <add>, %22, %cst_5 [0] : vector<256x8xf32> to vector<8xf32>
    %24 = vector.shape_cast %23 : vector<8xf32> to vector<1x8xf32>
    %cst_6 = arith.constant 3.906250e-03 : f32
    %25 = vector.broadcast %cst_6 : f32 to vector<1x8xf32>
    %26 = arith.mulf %24, %25 : vector<1x8xf32>
    %27 = vector.broadcast %26 : vector<1x8xf32> to vector<256x8xf32>
    %28 = arith.subf %22, %27 : vector<256x8xf32>
    %29 = arith.mulf %28, %28 : vector<256x8xf32>
    %cst_7 = arith.constant dense<0.000000e+00> : vector<8xf32>
    %30 = vector.multi_reduction <add>, %29, %cst_7 [0] : vector<256x8xf32> to vector<8xf32>
    %31 = vector.shape_cast %30 : vector<8xf32> to vector<1x8xf32>
    %32 = tpu.concatenate %24, %31 in 0 : vector<1x8xf32>, vector<1x8xf32> -> vector<2x8xf32>
    %c0_8 = arith.constant 0 : index
    %c0_9 = arith.constant 0 : index
    %c0_10 = arith.constant 0 : index
    %33 = vector.load %arg5[%c0_8, %c0_9, %c0_10] : memref<1x2x8xf32, #tpu.memory_space<vmem>>, vector<1x2x8xf32>
    %34 = vector.shape_cast %33 : vector<1x2x8xf32> to vector<2x8xf32>
    %35 = vector.shape_cast %32 : vector<2x8xf32> to vector<1x2x8xf32>
    tpu.vector_store %arg5[%c0_8, %c0_9, %c0_10], %35 {strides = array<i32>} : memref<1x2x8xf32, #tpu.memory_space<vmem>>, vector<1x2x8xf32>,
    %36 = tpu.transpose %22, [1, 0] : vector<256x8xf32> -> vector<8x256xf32>
    %37 = arith.truncf %36 : vector<8x256xf32> to vector<8x256xbf16>
    %c0_11 = arith.constant 0 : index
    %c0_12 = arith.constant 0 : index
    %c0_13 = arith.constant 0 : index
    %38 = vector.load %arg4[%c0_11, %c0_12, %c0_13] : memref<1x8x256xbf16, #tpu.memory_space<vmem>>, vector<1x8x256xbf16>
    %39 = vector.shape_cast %38 : vector<1x8x256xbf16> to vector<8x256xbf16>
    %40 = vector.shape_cast %37 : vector<8x256xbf16> to vector<1x8x256xbf16>
    tpu.vector_store %arg4[%c0_11, %c0_12, %c0_13], %40 {strides = array<i32>} : memref<1x8x256xbf16, #tpu.memory_space<vmem>>, vector<1x8x256xbf16>,
    return
  }
  func.func @transform_0(%arg0: i32, %arg1: i32) -> (i32, i32, i32, i32) {
    %c0_i32 = arith.constant 0 : i32
    %c0_i32_0 = arith.constant 0 : i32
    %c0_i32_1 = arith.constant 0 : i32
    %c0_i32_2 = arith.constant 0 : i32
    return %arg0, %c0_i32, %c0_i32_0, %c0_i32_1 : i32, i32, i32, i32
  }
  func.func @transform_1(%arg0: i32, %arg1: i32) -> (i32, i32) {
    %c0_i32 = arith.constant 0 : i32
    %c0_i32_0 = arith.constant 0 : i32
    return %c0_i32, %arg1 : i32, i32
  }
  func.func @transform_2(%arg0: i32, %arg1: i32) -> (i32, i32, i32) {
    %c0_i32 = arith.constant 0 : i32
    %c0_i32_0 = arith.constant 0 : i32
    return %arg0, %arg1, %c0_i32 : i32, i32, i32
  }
  func.func @transform_3(%arg0: i32, %arg1: i32) -> (i32, i32, i32) {
    %c0_i32 = arith.constant 0 : i32
    %c0_i32_0 = arith.constant 0 : i32
    return %arg0, %c0_i32, %arg1 : i32, i32, i32
  }
}

</mosaic_0001>

<bundles_post_ra>
// kernel: tpu_custom_call.1
= control target key start
LH: loop header
LB: loop body
LE: loop exit
PB: predicated region body
PF: predicated region fallthrough
CT: control target
= control target key end

     0   :  { %9 = vsyncpa [#allocation3], 0  ;;  %s3971_s0 = inlined_call_operand.vmem [shape: bf16[2,18,18,4], index: 0, kind: input, shape index: {}]   ;;  %s3972_s1 = inlined_call_operand.vmem [shape: bf16[36,8], index: 1, kind: input, shape index: {}]   ;;  %s3973_s2 = inlined_call_operand.hbm [shape: bf16[2,8,256], index: 2, kind: output, shape index: {0}]   ;;  %s3974_s3 = inlined_call_operand.hbm [shape: f32[2,2,8], index: 3, kind: output, shape index: {1}]  }
   0x1   :  { %11 = vsyncpa [#allocation3 + $0x1], 0 }
   0x2   :  { %12 = vsyncpa [#allocation5], 0 }
   0x3   :  { %14 = vsyncpa [#allocation5 + $0x1], 0  ;;  %s2676_s12 = smov 0   ;;  %s2678_s13 = smov 0  }
   0x4   :  { %s2680_s14 = smov 0   ;;  %s2682_s15 = smov 0  }
   0x5   :  { %s2684_s16 = smov 0   ;;  %s2686_s17 = smov 0  }
   0x6 LB: > { %s2236_s18 = sadd.s32 4294967295, %s2644_s17   ;;  %s2237_s19 = sadd.s32 4294967294, %s2644_s17   ;;  %s2644_s17 = sphi %s2686_s17, %s20_s17   ;;  %s2640_s16 = sphi %s2684_s16, %s3985_s16   ;;  %s2636_s15 = sphi %s2682_s15, %s3984_s15   ;;  %s2632_s14 = sphi %s2680_s14, %s3983_s14   ;;  %s2628_s13 = sphi %s2678_s13, %s3982_s13   ;;  %s2624_s12 = sphi %s2676_s12, %s3981_s12  }
   0x7   : > { %s32_s20 = sadd.s32 1, %s2640_s16  ;;  %s93_s21 = sadd.s32 1, %s2632_s14 }
   0x8   : > { %p34_p0 = scmp.ge.s32.totalorder %s32_s20, 2  ;;  %p103_p1 = scmp.ne.s32.totalorder %s2632_s14, %s2628_s13 }
   0x9   : > { %p104_p2 = scmp.eq.s32.totalorder %s2236_s18, 1  ;;  %p109_p3 = scmp.ne.s32.totalorder %s2628_s13, %s2624_s12 }
   0xa   : > { %s3987_s20 = smov (%p34_p0, %s32_s20), 0  ;;  %p110_p5 = scmp.eq.s32.totalorder %s2237_s19, 1 }
   0xb   : > { %p2716_p4 = por %p104_p2, %p103_p1  ;;  %s88_s23 = ssub.s32 %s2640_s16, %s3987_s20 }
   0xc   : > { %p2241_p6 = scmp.ge.s32.totalorder %s2644_s17, 1  ;;  %p91_p7 = scmp.eq.s32.totalorder %s88_s23, 0 }
   0xd   : > { %p2723_p8 = por %p110_p5, %p109_p3  ;;  %p171_p9 = scmp.lt.s32.totalorder %s2644_s17, 3 }
   0xe   : > { %s2729_s25 = scalar_select %p91_p7, %s2632_s14, %s93_s21  }
   0xf   : > { %p172_p10 = pnand %p2241_p6, %p171_p9 }
  0x10   : > { %p204_p11 = scmp.lt.s32.totalorder (!%p172_p10), %s2636_s15, 1  ;;  %s2646_s4 = smov (!%p172_p10), 12  }
  0x11   : > { %175 = sbr.rel (%p172_p10) target bundleno = 741 (0x2e5), region = 28  ;;  %s2647_s5 = smov (!%p172_p10), 20  }
  0x12   : > { %s2648_s6 = smov (!%p172_p10), 8   ;;  %s2649_s7 = smov (!%p172_p10), 4  }
  0x13   : > { %s2650_s8 = smov (!%p172_p10), 16   ;;  %s2651_s9 = smov (!%p172_p10), 24  }
  0x14   : > { %s2652_s10 = smov (!%p172_p10), 28   ;;  %s2653_s11 = smov (!%p172_p10), 32  }
  0x15   : > { %s3852_s28 = sand.u32 (!%p172_p10), 1, %s2628_s13  }
  0x16   : > { %s205_s26 = scalar_select %p204_p11, %s2636_s15, 1  ;;  %vm703_vm0 = vcmask 1042432   ;;  %vm704_vm1 = vcmask 1046532   ;;  %vm268_vm2 = vsmask.f32 3328  ;;  %vm1637_vm6 = vcmask 1041408  }
  0x17   : > { %vm269_vm3 = vsmask.f32 7440  ;;  %vm2758_vm4 = vmor %vm703_vm0, %vm704_vm1  ;;  %vm1304_vm7 = vcmask 31744   ;;  %vm1353_vm8 = vcmask 64512   ;;  %vm1386_vm9 = vcmask 97280   ;;  %s2242_s29 = sshll.u32 %s3852_s28, 3 }
  0x18   : > { %s2411_s27 = smul.u32 216, %s205_s26  ;;  %vm2793_vm5 = vmor %vm268_vm2, %vm269_vm3  ;;  %vm1419_vm10 = vcmask 130048   ;;  %vm1452_vm11 = vcmask 162816   ;;  %vm1485_vm12 = vcmask 195584   ;;  %vm1518_vm13 = vcmask 228352  }
  0x19   : > { %vm1551_vm14 = vcmask 261120   ;;  %vm1604_vm15 = vcmask 293888  }
  0x1a   : > { %s2736_s30 = scalar_lea.vmem %s3971_s0, %s2411_s27 }
  0x1b   : > { %v2739_v0 = vld [vmem:[%s2736_s30 + $0x18] sm:$0xf]  ;;  %v2742_v1 = vld [vmem:[%s2736_s30 + $0x1c] sm:$0xf]  ;;  %v217_v2 = vld [vmem:[%s2736_s30 + $0xc] sm:$0xf] }
  0x1c   : > { %v333_v3 = vshrl.u32 %v2742_v1, 16  ;;  %v2748_v4 = vcombine.low %v2739_v0, %v2742_v1  ;;  %v320_v5 = vshrl.u32 %v2739_v0, 16  ;;  %v323_v6 = vshll.u32 %v2739_v0, 16  ;;  %v218_v7 = vld [vmem:[%s2736_s30 + $0x10] sm:$0xf] }
  0x1d   : > { %v305_v8 = vshll.u32 %v218_v7, 16  ;;  %v309_v9 = vshrl.u32 %v218_v7, 16  ;;  %v2753_v10 = vcombine.low %v217_v2, %v218_v7  ;;  %v296_v11 = vshrl.u32 %v217_v2, 16  ;;  %v219_v12 = vld [vmem:[%s2736_s30 + $0x14] sm:$0x1] }
  0x1e   : > { %1099 = vrot.lane.b32.xlu1 %v2748_v4, %s2646_s4  ;;  %v299_v14 = vshll.u32 %v217_v2, 16  ;;  %v2246_v15 = vrot.slane %v217_v2, 9  ;;  %v715_v16 = vrot.slane %v218_v7, 5  ;;  %v718_v17 = vrot.slane %v219_v12, 5  ;;  %v2765_v18 = vld [vmem:[%s2736_s30] sm:$0xf] }
  0x1f   : > { %v311_v19 = vrot.slane %v309_v9, 4  ;;  %1097 = vrot.lane.b32.xlu0 %v2753_v10, %s2646_s4  ;;  %v298_v20 = vrot.slane %v296_v11, 4  ;;  %v2770_v21 = vld [vmem:[%s2736_s30 + $0x4] sm:$0xf]  ;;  %v216_v22 = vld [vmem:[%s2736_s30 + $0x8] sm:$0x1] }
  0x20   : > { %v301_v23 = vrot.slane %v299_v14, 5  ;;  %v716_v24 = vsel %vm2758_vm4, %v2246_v15, %v715_v16  ;;  %v717_v25 = vrot.slane %v715_v16, 4  ;;  %v2245_v26 = vrot.slane %v2765_v18, 9  ;;  %v222_v35 = vld [vmem:[%s2736_s30 + $0x20] sm:$0x1] }
  0x21   : > { %v708_v27 = vrot.slane %v2770_v21, 5  ;;  %v711_v28 = vrot.slane %v216_v22, 5  ;;  %v272_v29 = vshrl.u32 %v2765_v18, 16  ;;  %v275_v30 = vshll.u32 %v2765_v18, 16  ;;  %v2807_v7 = vld [vmem:[%s2736_s30 + $0x24] sm:$0xf] }
  0x22   : > { %v719_v31 = vsel %vm2758_vm4, %v717_v25, %v718_v17  ;;  %v281_v32 = vshll.u32 %v2770_v21, 16  ;;  %v285_v33 = vshrl.u32 %v2770_v21, 16  ;;  %v291_v34 = vshll.u32 %v216_v22, 16 }
  0x23   : > { %v2296_v36 = vcombine.low %v716_v24, %v719_v31  ;;  %v709_v37 = vsel %vm2758_vm4, %v2245_v26, %v708_v27  ;;  %v710_v38 = vrot.slane %v708_v27, 4  ;;  %v274_v39 = vrot.slane %v272_v29, 4  ;;  %v225_v26 = vld [vmem:[%s2736_s30 + $0x2c] sm:$0x1] }
  0x24   : > { %v277_v40 = vrot.slane %v275_v30, 5  ;;  %v283_v41 = vrot.slane %v281_v32, 5  ;;  %v287_v42 = vrot.slane %v285_v33, 4  ;;  %v293_v43 = vrot.slane %v291_v34, 5 }
  0x25   : > { %1167 = vrot.lane.b32.xlu0 %v2296_v36, %s2647_s5  ;;  %v712_v44 = vsel %vm2758_vm4, %v710_v38, %v711_v28  ;;  %v2247_v45 = vrot.slane %v2739_v0, 9  ;;  %v722_v46 = vrot.slane %v2742_v1, 5  ;;  %v725_v47 = vrot.slane %v222_v35, 5 }
  0x26   : > { %v2295_v48 = vcombine.low %v709_v37, %v712_v44  ;;  %v278_v49 = vor.u32 %v277_v40, %v274_v39  ;;  %v288_v50 = vor.u32 %v287_v42, %v283_v41  ;;  %v302_v51 = vor.u32 %v301_v23, %v298_v20 }
  0x27   : > { %v723_v53 = vsel %vm2758_vm4, %v2247_v45, %v722_v46  ;;  %v724_v54 = vrot.slane %v722_v46, 4  ;;  %v307_v55 = vrot.slane %v305_v8, 5  ;;  %v315_v56 = vshll.u32 %v219_v12, 16  ;;  %v224_v12 = vld [vmem:[%s2736_s30 + $0x28] sm:$0xf] }
  0x28   : > { %1062 = vrot.lane.b32.xlu1 %v2295_v48, %s2648_s6  ;;  %v279_v57 = vrot.slane %v278_v49, 4  ;;  %v289_v58 = vrot.slane %v288_v50, 4  ;;  %v303_v59 = vrot.slane %v302_v51, 4  ;;  %v322_v60 = vrot.slane %v320_v5, 4  ;;  %v227_v48 = vld [vmem:[%s2736_s30 + $0x34] sm:$0xf] }
  0x29   : > { %v726_v61 = vsel %vm2758_vm4, %v724_v54, %v725_v47  ;;  %v312_v62 = vor.u32 %v311_v19, %v307_v55  ;;  %v317_v63 = vrot.slane %v315_v56, 5  ;;  %v325_v2 = vrot.slane %v323_v6, 5  ;;  %v226_v47 = vld [vmem:[%s2736_s30 + $0x30] sm:$0xf] }
  0x2a   : > { %v284_v8 = vsel %vm2793_vm5, %v279_v57, %v283_v41  ;;  %v294_v9 = vsel %vm2793_vm5, %v289_v58, %v293_v43  ;;  %v2813_v11 = vcombine.low %v723_v53, %v726_v61  ;;  %v308_v5 = vsel %vm2793_vm5, %v303_v59, %v307_v55 }
  0x2b   : > { %v2279_v14 = vcombine.low %v284_v8, %v294_v9  ;;  %v313_v15 = vrot.slane %v312_v62, 4  ;;  %v326_v16 = vor.u32 %v325_v2, %v322_v60  ;;  %v329_v0 = vshll.u32 %v2742_v1, 16  ;;  %v228_v60 = vld [vmem:[%s2736_s30 + $0x38] sm:$0x1] }
  0x2c   : > { %1064 = vrot.lane.b32.xlu1 %v2296_v36, %s2648_s6  ;;  %v335_v6 = vrot.slane %v333_v3, 4  ;;  %v339_v17 = vshll.u32 %v222_v35, 16  ;;  %v344_v19 = vshrl.u32 %v2807_v7, 16  ;;  %v347_v20 = vshll.u32 %v2807_v7, 16 }
  0x2d   : > { %982 = vrot.lane.b32.xlu0 %v2279_v14, %s2649_s7  ;;  %v318_v22 = vsel %vm2793_vm5, %v313_v15, %v317_v63  ;;  %v327_v23 = vrot.slane %v326_v16, 4  ;;  %v331_v24 = vrot.slane %v329_v0, 5  ;;  %v357_v25 = vshrl.u32 %v224_v12, 16  ;;  %v2865_v14 = vld [vmem:[%s2736_s30 + $0x40] sm:$0xf] }
  0x2e   : > { %v2280_v27 = vcombine.low %v308_v5, %v318_v22  ;;  %v346_v28 = vrot.slane %v344_v19, 4  ;;  %v341_v1 = vrot.slane %v339_v17, 5  ;;  %v349_v3 = vrot.slane %v347_v20, 5 }
  0x2f   : > { %v336_v29 = vor.u32 %v335_v6, %v331_v24  ;;  %v353_v30 = vshll.u32 %v224_v12, 16  ;;  %v359_v31 = vrot.slane %v357_v25, 4  ;;  %v363_v32 = vshll.u32 %v225_v26, 16 }
  0x30   : > { %1169 = vrot.lane.b32.xlu1 %v2813_v11, %s2647_s5  ;;  %v332_v33 = vsel %vm2793_vm5, %v327_v23, %v331_v24  ;;  %v350_v35 = vor.u32 %v349_v3, %v346_v28  ;;  %v2838_v43 = vcombine.low %v2807_v7, %v224_v12  ;;  %v729_v44 = vrot.slane %v224_v12, 5  ;;  %v2862_v12 = vld [vmem:[%s2736_s30 + $0x3c] sm:$0xf] }
  0x31   : > { %984 = vrot.lane.b32.xlu0 %v2280_v27, %s2649_s7  ;;  %v337_v34 = vrot.slane %v336_v29, 4  ;;  %v355_v36 = vrot.slane %v353_v30, 5  ;;  %v365_v40 = vrot.slane %v363_v32, 5  ;;  %v2248_v50 = vrot.slane %v2807_v7, 9 }
  0x32   : > { %v351_v38 = vrot.slane %v350_v35, 4  ;;  %v731_v51 = vrot.slane %v729_v44, 4  ;;  %v732_v53 = vrot.slane %v225_v26, 5  ;;  %v368_v54 = vshrl.u32 %v226_v47, 16 }
  0x33   : > { %v342_v37 = vsel %vm2793_vm5, %v337_v34, %v341_v1  ;;  %v360_v39 = vor.u32 %v359_v31, %v355_v36  ;;  %v371_v55 = vshll.u32 %v226_v47, 16  ;;  %v381_v56 = vshrl.u32 %v227_v48, 16  ;;  %v231_v31 = vld [vmem:[%s2736_s30 + $0x44] sm:$0x1] }
  0x34   : > { %v2281_v41 = vcombine.low %v332_v33, %v342_v37  ;;  %v356_v45 = vsel %vm2793_vm5, %v351_v38, %v355_v36  ;;  %v377_v57 = vshll.u32 %v227_v48, 16  ;;  %v730_v58 = vsel %vm2758_vm4, %v2248_v50, %v729_v44 }
  0x35   : > { %1132 = vrot.lane.b32.xlu0 %v2280_v27, %s2650_s8  ;;  %v361_v42 = vrot.slane %v360_v39, 4  ;;  %v733_v59 = vsel %vm2758_vm4, %v731_v51, %v732_v53  ;;  %v370_v61 = vrot.slane %v368_v54, 4  ;;  %v373_v62 = vrot.slane %v371_v55, 5 }
  0x36   : > { %1134 = vrot.lane.b32.xlu1 %v2281_v41, %s2650_s8  ;;  %v379_v63 = vrot.slane %v377_v57, 5  ;;  %v383_v2 = vrot.slane %v381_v56, 4  ;;  %v2298_v7 = vcombine.low %v730_v58, %v733_v59  ;;  %v387_v8 = vshll.u32 %v228_v60, 16  ;;  %v2529_v59 = vld [vmem:[%s3972_s1 + $0x8] sm:$0xff]  }
  0x37   : > { %v366_v46 = vsel %vm2793_vm5, %v361_v42, %v365_v40  ;;  %v374_v9 = vor.u32 %v373_v62, %v370_v61  ;;  %v736_v16 = vrot.slane %v227_v48, 5  ;;  %v392_v0 = vshrl.u32 %v2862_v12, 16 }
  0x38   : > { %v2282_v49 = vcombine.low %v356_v45, %v366_v46  ;;  %v384_v5 = vor.u32 %v383_v2, %v379_v63  ;;  %v389_v15 = vrot.slane %v387_v8, 5  ;;  %v395_v6 = vshll.u32 %v2862_v12, 16 }
  0x39   : > { %1202 = vrot.lane.b32.xlu0 %v2748_v4, %s2651_s9  ;;  %v375_v17 = vrot.slane %v374_v9, 4  ;;  %v405_v20 = vshrl.u32 %v2865_v14, 16  ;;  %v401_v22 = vshll.u32 %v2865_v14, 16  ;;  %v2875_v23 = vcombine.low %v226_v47, %v227_v48  ;;  %v2913_v48 = vld [vmem:[%s2736_s30 + $0x4c] sm:$0xf] }
  0x3a   : > { %1204 = vrot.lane.b32.xlu1 %v2838_v43, %s2651_s9  ;;  %v385_v19 = vrot.slane %v384_v5, 4  ;;  %v2249_v24 = vrot.slane %v226_v47, 9  ;;  %v738_v25 = vrot.slane %v736_v16, 4  ;;  %v739_v26 = vrot.slane %v228_v60, 5  ;;  %v2910_v47 = vld [vmem:[%s2736_s30 + $0x48] sm:$0xf] }
  0x3b   : > { %v394_v27 = vrot.slane %v392_v0, 4  ;;  %v397_v28 = vrot.slane %v395_v6, 5  ;;  %v380_v29 = vsel %vm2793_vm5, %v375_v17, %v379_v63  ;;  %v403_v3 = vrot.slane %v401_v22, 5  ;;  %v234_v63 = vld [vmem:[%s2736_s30 + $0x50] sm:$0x1]  ;;  %v2530_v5 = vld [vmem:[%s3972_s1] sm:$0xff]  }
  0x3c   : > { %v390_v1 = vsel %vm2793_vm5, %v385_v19, %v389_v15  ;;  %v407_v30 = vrot.slane %v405_v20, 4  ;;  %v737_v32 = vsel %vm2758_vm4, %v2249_v24, %v736_v16  ;;  %v740_v33 = vsel %vm2758_vm4, %v738_v25, %v739_v26  ;;  %v2947_v0 = vld [vmem:[%s2736_s30 + $0x54] sm:$0xf]  ;;  %v2950_v6 = vld [vmem:[%s2736_s30 + $0x58] sm:$0xf] }
  0x3d   : > { %1237 = vrot.lane.b32.xlu0 %v2281_v41, %s2652_s10  ;;  %v398_v34 = vor.u32 %v397_v28, %v394_v27  ;;  %v411_v36 = vshll.u32 %v231_v31, 16  ;;  %v2893_v37 = vcombine.low %v737_v32, %v740_v33  ;;  %v743_v42 = vrot.slane %v2865_v14, 5 }
  0x3e   : > { %1239 = vrot.lane.b32.xlu1 %v2282_v49, %s2652_s10  ;;  %v408_v35 = vor.u32 %v407_v30, %v403_v3  ;;  %v2263_v44 = vcombine.low %v2765_v18, %v2770_v21  ;;  %v2250_v50 = vrot.slane %v2862_v12, 9  ;;  %v746_v54 = vrot.slane %v231_v31, 5 }
  0x3f   : > { %v399_v38 = vrot.slane %v398_v34, 4  ;;  %v413_v40 = vrot.slane %v411_v36, 5  ;;  %v745_v53 = vrot.slane %v743_v42, 4  ;;  %v416_v55 = vshrl.u32 %v2910_v47, 16 }
  0x40   : > { %v409_v39 = vrot.slane %v408_v35, 4  ;;  %v419_v56 = vshll.u32 %v2910_v47, 16  ;;  %v429_v57 = vshrl.u32 %v2913_v48, 16  ;;  %v425_v58 = vshll.u32 %v2913_v48, 16  ;;  %v237_v35 = vld [vmem:[%s2736_s30 + $0x5c] sm:$0x1] }
  0x41   : > { %1272 = vrot.lane.b32.xlu0 %v2813_v11, %s2653_s11  ;;  %v404_v45 = vsel %vm2793_vm5, %v399_v38, %v403_v3  ;;  %v744_v61 = vsel %vm2758_vm4, %v2250_v50, %v743_v42  ;;  %v747_v62 = vsel %vm2758_vm4, %v745_v53, %v746_v54  ;;  %v418_v2 = vrot.slane %v416_v55, 4  ;;  %v238_v54 = vld [vmem:[%s2736_s30 + $0x60] sm:$0xf]  ;;  %v239_v55 = vld [vmem:[%s2736_s30 + $0x64] sm:$0xf] }
  0x42   : > { %986 = vrot.lane.b32.xlu1 %v2281_v41, %s2649_s7  ;;  %v2900_v41 = vcombine.low %v2862_v12, %v2865_v14  ;;  %v414_v46 = vsel %vm2793_vm5, %v409_v39, %v413_v40  ;;  %v427_v8 = vrot.slane %v425_v58, 5  ;;  %v431_v9 = vrot.slane %v429_v57, 4 }
  0x43   : > { %v2923_v51 = vcombine.low %v404_v45, %v414_v46  ;;  %v2300_v12 = vcombine.low %v744_v61, %v747_v62  ;;  %v435_v14 = vshll.u32 %v234_v63, 16  ;;  %v750_v19 = vrot.slane %v2913_v48, 5 }
  0x44   : > { %v432_v16 = vor.u32 %v431_v9, %v427_v8  ;;  %v440_v20 = vshrl.u32 %v2947_v0, 16  ;;  %v443_v22 = vshll.u32 %v2947_v0, 16  ;;  %v453_v26 = vshrl.u32 %v2950_v6, 16 }
  0x45   : > { %1274 = vrot.lane.b32.xlu0 %v2298_v7, %s2653_s11  ;;  %v437_v17 = vrot.slane %v435_v14, 5  ;;  %v449_v27 = vshll.u32 %v2950_v6, 16  ;;  %v2964_v28 = vcombine.low %v2910_v47, %v2913_v48  ;;  %v753_v3 = vrot.slane %v234_v63, 5 }
  0x46   : > { %988 = vrot.lane.b32.xlu1 %v2282_v49, %s2649_s7  ;;  %v433_v25 = vrot.slane %v432_v16, 4  ;;  %v442_v30 = vrot.slane %v440_v20, 4  ;;  %v445_v31 = vrot.slane %v443_v22, 5  ;;  %v455_v34 = vrot.slane %v453_v26, 4 }
  0x47   : > { %v451_v33 = vrot.slane %v449_v27, 5  ;;  %v459_v42 = vshll.u32 %v237_v35, 16  ;;  %v757_v50 = vrot.slane %v2950_v6, 5  ;;  %v760_v57 = vrot.slane %v237_v35, 5 }
  0x48   : > { %v438_v32 = vsel %vm2793_vm5, %v433_v25, %v437_v17  ;;  %v446_v39 = vor.u32 %v445_v31, %v442_v30  ;;  %v467_v61 = vshll.u32 %v238_v54, 16  ;;  %v477_v62 = vshrl.u32 %v239_v55, 16  ;;  %v3012_v17 = vld [vmem:[%s2736_s30 + $0x6c] sm:$0xf] }
  0x49   : > { %1066 = vrot.lane.b32.xlu0 %v2813_v11, %s2648_s6  ;;  %v2283_v11 = vcombine.low %v380_v29, %v390_v1  ;;  %v2251_v29 = vrot.slane %v2910_v47, 9  ;;  %v752_v1 = vrot.slane %v750_v19, 4  ;;  %v456_v40 = vor.u32 %v455_v34, %v451_v33 }
  0x4a   : > { %1068 = vrot.lane.b32.xlu1 %v2298_v7, %s2648_s6  ;;  %v447_v46 = vrot.slane %v446_v39, 4  ;;  %v461_v48 = vrot.slane %v459_v42, 5  ;;  %v473_v63 = vshll.u32 %v239_v55, 16  ;;  %v469_v9 = vrot.slane %v467_v61, 5  ;;  %v3064_v61 = vld [vmem:[%s2736_s30 + $0x7c] sm:$0xf] }
  0x4b   : > { %v754_v38 = vsel %vm2758_vm4, %v752_v1, %v753_v3  ;;  %v457_v47 = vrot.slane %v456_v40, 4  ;;  %v479_v14 = vrot.slane %v477_v62, 4  ;;  %v488_v25 = vshrl.u32 %v3012_v17, 16 }
  0x4c   : > { %v452_v53 = vsel %vm2793_vm5, %v447_v46, %v451_v33  ;;  %v491_v27 = vshll.u32 %v3012_v17, 16  ;;  %v3024_v3 = vcombine.low %v238_v54, %v239_v55  ;;  %v2253_v30 = vrot.slane %v238_v54, 9 }
  0x4d   : > { %1101 = vrot.lane.b32.xlu0 %v2838_v43, %s2646_s4  ;;  %v490_v33 = vrot.slane %v488_v25, 4 }
  0x4e   : > { %1103 = vrot.lane.b32.xlu1 %v2875_v23, %s2646_s4  ;;  %v493_v35 = vrot.slane %v491_v27, 5 }
  0x51   : > { %1136 = vrot.lane.b32.xlu0 %v2282_v49, %s2650_s8  ;;  %v2527_v49 = vld [vmem:[%s3972_s1 + $0x10] ss:$0 sps:$4 sm:$0x33]  }
  0x52   : > { %1138 = vrot.lane.b32.xlu1 %v2283_v11, %s2650_s8  ;;  %2409 = vmatprep.subr.msk.bf16.mxu0 %vm1637_vm6, %v2527_v49  ;;  %v1639_v60 = vsel %vm1637_vm6, %v2527_v49, 0 }
  0x53   : > { %2410 = vmatprep.subr.msk.bf16.mxu1 %vm1637_vm6, %v2527_v49  ;;  %2366 = vmatpush3.bf16.msra.mxu0 %v1639_v60  ;;  %v2988_v49 = vcombine.low %v2947_v0, %v2950_v6 }
  0x54   : > { %2367 = vmatprep.subr.bf16.mxu0 %v2529_v59  ;;  %2406 = vmatpush3.bf16.msra.mxu1 %v1639_v60  ;;  %v464_v60 = vshrl.u32 %v238_v54, 16 }
  0x55   : > { %1171 = vrot.lane.b32.xlu0 %v2298_v7, %s2647_s5  ;;  %v421_v7 = vrot.slane %v419_v56, 5  ;;  %2404 = vmatprep.subr.bf16.mxu1 %v2529_v59  ;;  %v2252_v56 = vrot.slane %v2947_v0, 9 }
  0x56   : > { %1173 = vrot.lane.b32.xlu1 %v2893_v37, %s2647_s5 }
  0x57   : > { %2368 = vmatpush3.bf16.msra.mxu0 %v2529_v59  ;;  %v422_v15 = vor.u32 %v421_v7, %v418_v2  ;;  %v758_v2 = vsel %vm2758_vm4, %v2252_v56, %v757_v50 }
  0x58   : > { %2369 = vmatprep.subr.bf16.mxu0 %v2530_v5  ;;  %2407 = vmatpush3.bf16.msra.mxu1 %v2529_v59  ;;  %v759_v59 = vrot.slane %v757_v50, 4 }
  0x59   : > { %1206 = vrot.lane.b32.xlu0 %v2875_v23, %s2651_s9  ;;  %2405 = vmatprep.subr.bf16.mxu1 %v2530_v5  ;;  %v423_v24 = vrot.slane %v422_v15, 4 }
  0x5a   : > { %1208 = vrot.lane.b32.xlu1 %v2900_v41, %s2651_s9  ;;  %v761_v7 = vsel %vm2758_vm4, %v759_v59, %v760_v57 }
  0x5b   : > { %2370 = vmatpush3.bf16.msra.mxu0 %v2530_v5  ;;  %v2302_v15 = vcombine.low %v758_v2, %v761_v7 }
  0x5c   : > { %2408 = vmatpush3.bf16.msra.mxu1 %v2530_v5  ;;  %v240_v5 = vld [vmem:[%s2736_s30 + $0x68] sm:$0x1] }
  0x5d   : > { %1241 = vrot.lane.b32.xlu0 %v2283_v11, %s2652_s10  ;;  %v483_v0 = vshll.u32 %v240_v5, 16 }
  0x5e   : > { %1243 = vrot.lane.b32.xlu1 %v2923_v51, %s2652_s10 }
  0x5f   : > { %v485_v22 = vrot.slane %v483_v0, 5 }
  0x61   : > { %1276 = vrot.lane.b32.xlu0 %v2893_v37, %s2653_s11 }
  0x62   : > { %990 = vrot.lane.b32.xlu1 %v2283_v11, %s2649_s7  ;;  %v428_v11 = vsel %vm2793_vm5, %v423_v24, %v427_v8  ;;  %v466_v8 = vrot.slane %v464_v60, 4  ;;  %v764_v24 = vrot.slane %v239_v55, 5  ;;  %v3061_v60 = vld [vmem:[%s2736_s30 + $0x78] sm:$0xf] }
  0x63   : > { %v2285_v36 = vcombine.low %v428_v11, %v438_v32  ;;  %v767_v32 = vrot.slane %v240_v5, 5  ;;  %v512_v5 = vshrl.u32 %v3061_v60, 16  ;;  %v3119_v18 = vcombine.low %v3061_v60, %v3064_v61 }
  0x64   : > { %v470_v16 = vor.u32 %v469_v9, %v466_v8  ;;  %v766_v11 = vrot.slane %v764_v24, 4  ;;  %v765_v40 = vsel %vm2758_vm4, %v2253_v30, %v764_v24  ;;  %v2255_v21 = vrot.slane %v3061_v60, 9 }
  0x65   : > { %1278 = vrot.lane.b32.xlu0 %v2300_v12, %s2653_s11 }
  0x66   : > { %992 = vrot.lane.b32.xlu1 %v2923_v51, %s2649_s7  ;;  %v471_v20 = vrot.slane %v470_v16, 4  ;;  %v768_v42 = vsel %vm2758_vm4, %v766_v11, %v767_v32  ;;  %v3095_v11 = vld [vmem:[%s2736_s30 + $0x84] sm:$0xf]  ;;  %v3098_v32 = vld [vmem:[%s2736_s30 + $0x88] sm:$0xf] }
  0x69   : > { %1070 = vrot.lane.b32.xlu0 %v2893_v37, %s2648_s6  ;;  %v751_v37 = vsel %vm2758_vm4, %v2251_v29, %v750_v19  ;;  %v3015_v19 = vld [vmem:[%s2736_s30 + $0x70] sm:$0xf] }
  0x6a   : > { %1072 = vrot.lane.b32.xlu1 %v2300_v12, %s2648_s6  ;;  %v2301_v45 = vcombine.low %v751_v37, %v754_v38  ;;  %v501_v29 = vshrl.u32 %v3015_v19, 16  ;;  %v497_v1 = vshll.u32 %v3015_v19, 16  ;;  %v243_v38 = vld [vmem:[%s2736_s30 + $0x74] sm:$0x1]  ;;  %v3053_v56 = vcombine.low %v3012_v17, %v3015_v19 }
  0x6b   : > { %v771_v57 = vrot.slane %v3015_v19, 5  ;;  %v774_v2 = vrot.slane %v243_v38, 5 }
  0x6c   : > { %v503_v37 = vrot.slane %v501_v29, 4 }
  0x6d   : > { %1105 = vrot.lane.b32.xlu0 %v2900_v41, %s2646_s4  ;;  %v773_v9 = vrot.slane %v771_v57, 4 }
  0x6e   : > { %1107 = vrot.lane.b32.xlu1 %v2964_v28, %s2646_s4 }
  0x71   : > { %1140 = vrot.lane.b32.xlu0 %v2923_v51, %s2650_s8  ;;  %v462_v51 = vsel %vm2793_vm5, %v457_v47, %v461_v48  ;;  %v507_v47 = vshll.u32 %v243_v38, 16  ;;  %v3042_v48 = vcombine.low %v765_v40, %v768_v42  ;;  %v549_v42 = vshrl.u32 %v3098_v32, 16 }
  0x72   : > { %1142 = vrot.lane.b32.xlu1 %v2285_v36, %s2650_s8  ;;  %v2286_v58 = vcombine.low %v452_v53, %v462_v51 }
  0x73   : > { %v509_v54 = vrot.slane %v507_v47, 5 }
  0x75   : > { %1175 = vrot.lane.b32.xlu0 %v2300_v12, %s2647_s5  ;;  %v475_v12 = vrot.slane %v473_v63, 5  ;;  %v2254_v63 = vrot.slane %v3012_v17, 9  ;;  %v514_v17 = vrot.slane %v512_v5, 4 }
  0x76   : > { %1177 = vrot.lane.b32.xlu1 %v2301_v45, %s2647_s5 }
  0x77   : > { %v480_v6 = vor.u32 %v479_v14, %v475_v12  ;;  %v476_v31 = vsel %vm2793_vm5, %v471_v20, %v475_v12  ;;  %v515_v12 = vshll.u32 %v3061_v60, 16  ;;  %v525_v14 = vshrl.u32 %v3064_v61, 16 }
  0x78   : > { %v772_v0 = vsel %vm2758_vm4, %v2254_v63, %v771_v57 }
  0x79   : > { %1210 = vrot.lane.b32.xlu0 %v2964_v28, %s2651_s9  ;;  %v481_v26 = vrot.slane %v480_v6, 4  ;;  %v775_v6 = vsel %vm2758_vm4, %v773_v9, %v774_v2  ;;  %v517_v19 = vrot.slane %v515_v12, 5  ;;  %v527_v25 = vrot.slane %v525_v14, 4  ;;  %v3131_v2 = vld [vmem:[%s2736_s30 + $0x8c] sm:$0x1] }
  0x7a   : > { %1212 = vrot.lane.b32.xlu1 %v2988_v49, %s2651_s9 }
  0x7b   : > { %v486_v34 = vsel %vm2793_vm5, %v481_v26, %v485_v22  ;;  %v246_v22 = vld [vmem:[%s2736_s30 + $0x80] sm:$0x1]  ;;  %v3089_v26 = vcombine.low %v772_v0, %v775_v6  ;;  %v518_v29 = vor.u32 %v517_v19, %v514_v17  ;;  %v555_v6 = vshll.u32 %v3131_v2, 16 }
  0x7c   : > { %v2287_v39 = vcombine.low %v476_v31, %v486_v34 }
  0x7d   : > { %1245 = vrot.lane.b32.xlu0 %v2285_v36, %s2652_s10  ;;  %v519_v34 = vrot.slane %v518_v29, 4 }
  0x7e   : > { %1247 = vrot.lane.b32.xlu1 %v2286_v58, %s2652_s10 }
  0x81   : > { %1280 = vrot.lane.b32.xlu0 %v2301_v45, %s2653_s11 }
  0x82   : > { %994 = vrot.lane.b32.xlu1 %v2285_v36, %s2649_s7  ;;  %v499_v36 = vrot.slane %v497_v1, 5  ;;  %v531_v1 = vshll.u32 %v246_v22, 16 }
  0x84   : > { %v504_v46 = vor.u32 %v503_v37, %v499_v36  ;;  %v539_v37 = vshll.u32 %v3095_v11, 16 }
  0x85   : > { %1282 = vrot.lane.b32.xlu0 %v2302_v15, %s2653_s11 }
  0x86   : > { %996 = vrot.lane.b32.xlu1 %v2286_v58, %s2649_s7  ;;  %v505_v51 = vrot.slane %v504_v46, 4 }
  0x88   : > { %v510_v59 = vsel %vm2793_vm5, %v505_v51, %v509_v54 }
  0x89   : > { %1074 = vrot.lane.b32.xlu0 %v2301_v45, %s2648_s6  ;;  %v494_v45 = vor.u32 %v493_v35, %v490_v33  ;;  %v778_v33 = vrot.slane %v3064_v61, 5  ;;  %v533_v35 = vrot.slane %v531_v1, 5  ;;  %v557_v1 = vrot.slane %v555_v6, 5 }
  0x8a   : > { %1076 = vrot.lane.b32.xlu1 %v2302_v15, %s2648_s6 }
  0x8b   : > { %v495_v53 = vrot.slane %v494_v45, 4  ;;  %v545_v45 = vshll.u32 %v3098_v32, 16  ;;  %v779_v12 = vsel %vm2758_vm4, %v2255_v21, %v778_v33 }
  0x8d   : > { %1109 = vrot.lane.b32.xlu0 %v2988_v49, %s2646_s4 }
  0x8e   : > { %1111 = vrot.lane.b32.xlu1 %v3024_v3, %s2646_s4 }
  0x90   : > { %v3046_v55 = vpop.permute.xlu1 %1099 }
  0x91   : > { %1144 = vrot.lane.b32.xlu0 %v2286_v58, %s2650_s8  ;;  %v3044_v50 = vpop.permute.xlu0 %1097  ;;  %v500_v58 = vsel %vm2793_vm5, %v495_v53, %v499_v36  ;;  %v536_v36 = vshrl.u32 %v3095_v11, 16 }
  0x92   : > { %1146 = vrot.lane.b32.xlu1 %v2287_v39, %s2650_s8  ;;  %v3073_v8 = vcombine.low %v500_v58, %v510_v59  ;;  %v541_v58 = vrot.slane %v539_v37, 5  ;;  %v547_v59 = vrot.slane %v545_v45, 5  ;;  %v788_v45 = vrot.slane %v3131_v2, 5 }
  0x93   : > { %v538_v54 = vrot.slane %v536_v36, 4 }
  0x95   : > { %1179 = vrot.lane.b32.xlu0 %v2302_v15, %s2647_s5  ;;  %v521_v15 = vshll.u32 %v3064_v61, 16  ;;  %v551_v61 = vrot.slane %v549_v42, 4  ;;  %v3188_v42 = vld [vmem:[%s2736_s30 + $0x94] sm:$0xf] }
  0x96   : > { %1181 = vrot.lane.b32.xlu1 %v3042_v48, %s2647_s5 }
  0x97   : > { %v3068_v62 = vpop.permute.xlu0 %1167  ;;  %v523_v24 = vrot.slane %v521_v15, 5  ;;  %v552_v0 = vor.u32 %v551_v61, %v547_v59  ;;  %v252_v61 = vld [vmem:[%s2736_s30 + $0x98] sm:$0x1] }
  0x99   : > { %1214 = vrot.lane.b32.xlu0 %v3024_v3, %s2651_s9  ;;  %v528_v31 = vor.u32 %v527_v25, %v523_v24  ;;  %v524_v51 = vsel %vm2793_vm5, %v519_v34, %v523_v24  ;;  %v3173_v34 = vcombine.low %v3095_v11, %v3098_v32 }
  0x9a   : > { %1216 = vrot.lane.b32.xlu1 %v3053_v56, %s2651_s9  ;;  %v1063_v7 = vpop.permute.xlu1 %1062 }
  0x9b   : > { %v529_v40 = vrot.slane %v528_v31, 4 }
  0x9d   : > { %1249 = vrot.lane.b32.xlu0 %v2287_v39, %s2652_s10 }
  0x9e   : > { %1251 = vrot.lane.b32.xlu1 %v3073_v8, %s2652_s10  ;;  %v1065_v16 = vpop.permute.xlu1 %1064 }
  0x9f   : > { %v983_v20 = vpop.permute.xlu0 %982 }
  0xa0   : > { %v1307_v38 = vsel %vm1304_vm7, %v2263_v44, %v983_v20  ;;  %v781_v44 = vrot.slane %v246_v22, 5 }
  0xa1   : > { %1284 = vrot.lane.b32.xlu0 %v3042_v48, %s2653_s11  ;;  %v1355_v53 = vsel %vm1353_vm8, %v1307_v38, %v1063_v7  ;;  %v3182_v38 = vld [vmem:[%s2736_s30 + $0x90] sm:$0xf] }
  0xa2   : > { %998 = vrot.lane.b32.xlu1 %v2287_v39, %s2649_s7  ;;  %v3092_v27 = vpop.permute.xlu1 %1169  ;;  %v1388_v7 = vsel %vm1386_vm9, %v1355_v53, %v3044_v50  ;;  %v560_v21 = vshrl.u32 %v3182_v38, 16 }
  0xa3   : > { %v985_v30 = vpop.permute.xlu0 %984 }
  0xa4   : > { %v1310_v47 = vsel %vm1304_vm7, %v2753_v10, %v985_v30  ;;  %v780_v10 = vrot.slane %v778_v33, 4 }
  0xa5   : > { %1286 = vrot.lane.b32.xlu0 %v3089_v26, %s2653_s11  ;;  %v1357_v60 = vsel %vm1353_vm8, %v1310_v47, %v1065_v16  ;;  %v542_v16 = vor.u32 %v541_v58, %v538_v54 }
  0xa6   : > { %1000 = vrot.lane.b32.xlu1 %v3073_v8, %s2649_s7  ;;  %v782_v14 = vsel %vm2758_vm4, %v780_v10, %v781_v44  ;;  %v1390_v50 = vsel %vm1386_vm9, %v1357_v60, %v3046_v55  ;;  %v563_v44 = vshll.u32 %v3182_v38, 16  ;;  %v569_v10 = vshll.u32 %v3188_v42, 16 }
  0xa7   : > { %v1133_v39 = vpop.permute.xlu0 %1132  ;;  %v3157_v55 = vcombine.low %v779_v12, %v782_v14  ;;  %v543_v29 = vrot.slane %v542_v16, 4  ;;  %v579_v12 = vshll.u32 %v252_v61, 16 }
  0xa8   : > { %v1135_v46 = vpop.permute.xlu1 %1134  ;;  %v1421_v9 = vsel %vm1419_vm10, %v1388_v7, %v1133_v39  ;;  %v565_v58 = vrot.slane %v563_v44, 5  ;;  %v571_v60 = vrot.slane %v569_v10, 5 }
  0xa9   : > { %1078 = vrot.lane.b32.xlu0 %v3042_v48, %s2648_s6  ;;  %v534_v48 = vsel %vm2793_vm5, %v529_v40, %v533_v35  ;;  %v1454_v19 = vsel %vm1452_vm11, %v1421_v9, %v3068_v62  ;;  %v1423_v20 = vsel %vm1419_vm10, %v1390_v50, %v1135_v46  ;;  %v553_v62 = vrot.slane %v552_v0, 4  ;;  %v3224_v0 = vld [vmem:[%s2736_s30 + $0xa0] sm:$0xf] }
  0xaa   : > { %1080 = vrot.lane.b32.xlu1 %v3089_v26, %s2648_s6  ;;  %v3140_v5 = vcombine.low %v524_v51, %v534_v48  ;;  %v1456_v31 = vsel %vm1452_vm11, %v1423_v20, %v3092_v27  ;;  %v785_v35 = vrot.slane %v3098_v32, 5  ;;  %v548_v27 = vsel %vm2793_vm5, %v543_v29, %v547_v59 }
  0xab   : > { %v1203_v57 = vpop.permute.xlu0 %1202  ;;  %v2256_v32 = vrot.slane %v3095_v11, 9  ;;  %v573_v51 = vshrl.u32 %v3188_v42, 16  ;;  %v562_v48 = vrot.slane %v560_v21, 4  ;;  %v593_v29 = vshll.u32 %v3224_v0, 16 }
  0xac   : > { %v1205_v63 = vpop.permute.xlu1 %1204  ;;  %v1487_v22 = vsel %vm1485_vm12, %v1454_v19, %v1203_v57  ;;  %v787_v47 = vrot.slane %v785_v35, 4  ;;  %v792_v19 = vrot.slane %v3188_v42, 5 }
  0xad   : > { %1113 = vrot.lane.b32.xlu0 %v3053_v56, %s2646_s4  ;;  %v1489_v33 = vsel %vm1485_vm12, %v1456_v31, %v1205_v63  ;;  %v786_v11 = vsel %vm2758_vm4, %v2256_v32, %v785_v35  ;;  %v575_v63 = vrot.slane %v573_v51, 4  ;;  %v566_v9 = vor.u32 %v565_v58, %v562_v48 }
  0xae   : > { %1115 = vrot.lane.b32.xlu1 %v3119_v18, %s2646_s4  ;;  %v789_v57 = vsel %vm2758_vm4, %v787_v47, %v788_v45  ;;  %v795_v35 = vrot.slane %v252_v61, 5 }
  0xaf   : > { %v1238_v15 = vpop.permute.xlu0 %1237  ;;  %v3216_v7 = vcombine.low %v786_v11, %v789_v57  ;;  %v576_v50 = vor.u32 %v575_v63, %v571_v60  ;;  %v567_v6 = vrot.slane %v566_v9, 4 }
  0xb0   : > { %v1240_v17 = vpop.permute.xlu1 %1239  ;;  %v1520_v24 = vsel %vm1518_vm13, %v1487_v22, %v1238_v15  ;;  %v3221_v15 = vld [vmem:[%s2736_s30 + $0x9c] sm:$0xf] }
  0xb1   : > { %1148 = vrot.lane.b32.xlu0 %v3073_v8, %s2650_s8  ;;  %v1522_v36 = vsel %vm1518_vm13, %v1489_v33, %v1240_v17  ;;  %v581_v17 = vrot.slane %v579_v12, 5  ;;  %v577_v22 = vrot.slane %v576_v50, 4  ;;  %v572_v31 = vsel %vm2793_vm5, %v567_v6, %v571_v60 }
  0xb2   : > { %1150 = vrot.lane.b32.xlu1 %v3140_v5, %s2650_s8  ;;  %v794_v33 = vrot.slane %v792_v19, 4 }
  0xb3   : > { %v1273_v25 = vpop.permute.xlu0 %1272 }
  0xb4   : > { %v3160_v30 = vpop.permute.xlu1 %986  ;;  %v1553_v8 = vsel %vm1551_vm14, %v1520_v24, %v1273_v25  ;;  %v587_v24 = vshll.u32 %v3221_v15, 16  ;;  %v597_v25 = vshrl.u32 %v3224_v0, 16 }
  0xb5   : > { %1183 = vrot.lane.b32.xlu0 %v3089_v26, %s2647_s5  ;;  %2371 = vmatprep.mubr.msk.bf16.mxu0 %vm1604_vm15, %v1553_v8  ;;  %v558_v26 = vsel %vm2793_vm5, %v553_v62, %v557_v1  ;;  %v3239_v1 = vcombine.low %v3182_v38, %v3188_v42  ;;  %v2257_v8 = vrot.slane %v3182_v38, 9  ;;  %v1313_v38 = vsel %vm1304_vm7, %v2748_v4, %v3160_v30 }
  0xb6   : > { %1185 = vrot.lane.b32.xlu1 %v3157_v55, %s2647_s5  ;;  %v3197_v46 = vcombine.low %v548_v27, %v558_v26  ;;  %v582_v27 = vsel %vm2793_vm5, %v577_v22, %v581_v17  ;;  %v589_v26 = vrot.slane %v587_v24, 5  ;;  %v599_v42 = vrot.slane %v597_v25, 4  ;;  %v3305_v22 = vld [vmem:[%s2736_s30 + $0xa8] sm:$0xf] }
  0xb7   : > { %v1275_v37 = vpop.permute.xlu0 %1274  ;;  %v3259_v47 = vcombine.low %v572_v31, %v582_v27  ;;  %v793_v21 = vsel %vm2758_vm4, %v2257_v8, %v792_v19  ;;  %v796_v4 = vsel %vm2758_vm4, %v794_v33, %v795_v35  ;;  %v799_v17 = vrot.slane %v3224_v0, 5 }
  0xb8   : > { %v3184_v39 = vpop.permute.xlu1 %988  ;;  %v1555_v40 = vsel %vm1551_vm14, %v1522_v36, %v1275_v37  ;;  %v3279_v60 = vcombine.low %v793_v21, %v796_v4  ;;  %v608_v33 = vshrl.u32 %v3305_v22, 16  ;;  %v611_v35 = vshll.u32 %v3305_v22, 16 }
  0xb9   : > { %1218 = vrot.lane.b32.xlu0 %v3119_v18, %s2651_s9  ;;  %2372 = vmatmul.mubr.msk.bf16.vlgmr.msra.gmra.mxu0 %vm1604_vm15, %v1555_v40  ;;  %v595_v40 = vrot.slane %v593_v29, 5  ;;  %v1316_v48 = vsel %vm1304_vm7, %v2838_v43, %v3184_v39  ;;  %v3311_v29 = vld [vmem:[%s2736_s30 + $0xac] sm:$0xf]  ;;  %v801_v31 = vrot.slane %v799_v17, 4 }
  0xba   : > { %1220 = vrot.lane.b32.xlu1 %v3173_v34, %s2651_s9  ;;  %v617_v27 = vshll.u32 %v3311_v29, 16 }
  0xbb   : > { %v1067_v53 = vpop.permute.xlu0 %1066  ;;  %v600_v11 = vor.u32 %v599_v42, %v595_v40  ;;  %v613_v42 = vrot.slane %v611_v35, 5 }
  0xbc   : > { %v3203_v54 = vpop.permute.xlu1 %1068  ;;  %v1359_v45 = vsel %vm1353_vm8, %v1313_v38, %v1067_v53  ;;  %v258_v38 = vld [vmem:[%s2736_s30 + $0xb0] sm:$0x1] }
  0xbd   : > { %1253 = vrot.lane.b32.xlu0 %v3140_v5, %s2652_s10  ;;  %v627_v4 = vshll.u32 %v258_v38, 16 }
  0xbe   : > { %1255 = vrot.lane.b32.xlu1 %v3197_v46, %s2652_s10 }
  0xbf   : > { %v1102_v59 = vpop.permute.xlu0 %1101 }
  0xc0   : > { %v1104_v2 = vpop.permute.xlu1 %1103  ;;  %v1392_v51 = vsel %vm1386_vm9, %v1359_v45, %v1102_v59  ;;  %v1361_v59 = vsel %vm1353_vm8, %v1316_v48, %v3203_v54  ;;  %v619_v45 = vrot.slane %v617_v27, 5  ;;  %v3347_v48 = vld [vmem:[%s2736_s30 + $0xb8] sm:$0xf] }
  0xc1   : > { %1288 = vrot.lane.b32.xlu0 %v3157_v55, %s2653_s11  ;;  %v1394_v9 = vsel %vm1386_vm9, %v1361_v59, %v1104_v2  ;;  %v629_v59 = vrot.slane %v627_v4, 5 }
  0xc2   : > { %1002 = vrot.lane.b32.xlu1 %v3140_v5, %s2649_s7  ;;  %v584_v5 = vshrl.u32 %v3221_v15, 16 }
  0xc3   : > { %v1137_v14 = vpop.permute.xlu0 %1136 }
  0xc4   : > { %v1139_v16 = vpop.permute.xlu1 %1138  ;;  %v586_v36 = vrot.slane %v584_v5, 4  ;;  %v1425_v53 = vsel %vm1419_vm10, %v1392_v51, %v1137_v14  ;;  %v601_v14 = vrot.slane %v600_v11, 4 }
  0xc5   : > { %1290 = vrot.lane.b32.xlu0 %v3216_v7, %s2653_s11 }
  0xc6   : > { %1004 = vrot.lane.b32.xlu1 %v3197_v46, %s2649_s7  ;;  %v590_v30 = vor.u32 %v589_v26, %v586_v36 }
  0xc7   : > { %v1172_v20 = vpop.permute.xlu0 %1171 }
  0xc8   : > { %v1174_v62 = vpop.permute.xlu1 %1173  ;;  %v1458_v58 = vsel %vm1452_vm11, %v1425_v53, %v1172_v20  ;;  %v591_v12 = vrot.slane %v590_v30, 4  ;;  %v3344_v53 = vld [vmem:[%s2736_s30 + $0xb4] sm:$0xf] }
  0xc9   : > { %1082 = vrot.lane.b32.xlu0 %v3157_v55, %s2648_s6  ;;  %v3249_v55 = vld [vmem:[%s2736_s30 + $0xa4] sm:$0x1] }
  0xca   : > { %1084 = vrot.lane.b32.xlu1 %v3216_v7, %s2648_s6  ;;  %v603_v44 = vshll.u32 %v3249_v55, 16  ;;  %v596_v20 = vsel %vm2793_vm5, %v591_v12, %v595_v40  ;;  %v610_v40 = vrot.slane %v608_v33, 4  ;;  %v641_v12 = vshll.u32 %v3347_v48, 16 }
  0xcb   : > { %v1207_v37 = vpop.permute.xlu0 %1206 }
  0xcc   : > { %v1209_v32 = vpop.permute.xlu1 %1208  ;;  %v1491_v61 = vsel %vm1485_vm12, %v1458_v58, %v1207_v37  ;;  %v605_v63 = vrot.slane %v603_v44, 5  ;;  %v621_v37 = vshrl.u32 %v3311_v29, 16 }
  0xcd   : > { %1117 = vrot.lane.b32.xlu0 %v3173_v34, %s2646_s4 }
  0xce   : > { %1119 = vrot.lane.b32.xlu1 %v3239_v1, %s2646_s4  ;;  %v623_v21 = vrot.slane %v621_v37, 4 }
  0xcf   : > { %v1242_v10 = vpop.permute.xlu0 %1241 }
  0xd0   : > { %v1244_v57 = vpop.permute.xlu1 %1243  ;;  %v1524_v43 = vsel %vm1518_vm13, %v1491_v61, %v1242_v10  ;;  %v614_v10 = vor.u32 %v613_v42, %v610_v40  ;;  %v624_v11 = vor.u32 %v623_v21, %v619_v45  ;;  %v806_v61 = vrot.slane %v3311_v29, 5 }
  0xd1   : > { %1152 = vrot.lane.b32.xlu0 %v3197_v46, %s2650_s8  ;;  %v1427_v46 = vsel %vm1419_vm10, %v1394_v9, %v1139_v16  ;;  %v3296_v16 = vcombine.low %v3221_v15, %v3224_v0  ;;  %v2258_v0 = vrot.slane %v3221_v15, 9 }
  0xd2   : > { %1154 = vrot.lane.b32.xlu1 %v3259_v47, %s2650_s8  ;;  %v1460_v6 = vsel %vm1452_vm11, %v1427_v46, %v1174_v62  ;;  %v802_v62 = vrot.slane %v3249_v55, 5  ;;  %v615_v58 = vrot.slane %v614_v10, 4  ;;  %v625_v9 = vrot.slane %v624_v11, 4 }
  0xd3   : > { %v1277_v39 = vpop.permute.xlu0 %1276  ;;  %v1493_v2 = vsel %vm1485_vm12, %v1460_v6, %v1209_v32  ;;  %v800_v15 = vsel %vm2758_vm4, %v2258_v0, %v799_v17  ;;  %v3362_v46 = vcombine.low %v3305_v22, %v3311_v29  ;;  %v809_v17 = vrot.slane %v258_v38, 5 }
  0xd4   : > { %v3284_v50 = vpop.permute.xlu1 %990  ;;  %v1557_v54 = vsel %vm1551_vm14, %v1524_v43, %v1277_v39  ;;  %v1526_v19 = vsel %vm1518_vm13, %v1493_v2, %v1244_v57  ;;  %v803_v55 = vsel %vm2758_vm4, %v801_v31, %v802_v62  ;;  %v635_v43 = vshll.u32 %v3344_v53, 16 }
  0xd5   : > { %1187 = vrot.lane.b32.xlu0 %v3216_v7, %s2647_s5  ;;  %2375 = vmatprep.mubr.msk.bf16.mxu0 %vm1604_vm15, %v1557_v54  ;;  %v606_v7 = vsel %vm2793_vm5, %v601_v14, %v605_v63  ;;  %v3339_v51 = vcombine.low %v800_v15, %v803_v55  ;;  %v645_v39 = vshrl.u32 %v3347_v48, 16  ;;  %v2259_v54 = vrot.slane %v3305_v22, 9 }
  0xd6   : > { %1189 = vrot.lane.b32.xlu1 %v3279_v60, %s2647_s5  ;;  %v3320_v8 = vcombine.low %v596_v20, %v606_v7  ;;  %v620_v6 = vsel %vm2793_vm5, %v615_v58, %v619_v45  ;;  %v808_v2 = vrot.slane %v806_v61, 4  ;;  %v630_v20 = vsel %vm2793_vm5, %v625_v9, %v629_v59 }
  0xd7   : > { %v1279_v5 = vpop.permute.xlu0 %1278  ;;  %v637_v7 = vrot.slane %v635_v43, 5  ;;  %v647_v29 = vrot.slane %v645_v39, 4  ;;  %v1319_v22 = vsel %vm1304_vm7, %v2875_v23, %v3284_v50  ;;  %v3382_v31 = vcombine.low %v620_v6, %v630_v20 }
  0xd8   : > { %v3307_v24 = vpop.permute.xlu1 %992  ;;  %v1559_v25 = vsel %vm1551_vm14, %v1526_v19, %v1279_v5  ;;  %v807_v33 = vsel %vm2758_vm4, %v2259_v54, %v806_v61  ;;  %v810_v23 = vsel %vm2758_vm4, %v808_v2, %v809_v17  ;;  %v813_v61 = vrot.slane %v3347_v48, 5 }
  0xd9   : > { %1222 = vrot.lane.b32.xlu0 %v3239_v1, %s2651_s9  ;;  %2376 = vmatmul.mubr.msk.bf16.gmra.mxu0 %vm1604_vm15, %v1559_v25  ;;  %v643_v25 = vrot.slane %v641_v12, 5  ;;  %v1322_v40 = vsel %vm1304_vm7, %v2900_v41, %v3307_v24  ;;  %v3402_v45 = vcombine.low %v807_v33, %v810_v23  ;;  %v2260_v17 = vrot.slane %v3344_v53, 9 }
  0xda   : > { %1224 = vrot.lane.b32.xlu1 %v3296_v16, %s2651_s9 }
  0xdb   : > { %v1071_v36 = vpop.permute.xlu0 %1070  ;;  %v648_v15 = vor.u32 %v647_v29, %v643_v25 }
  0xdc   : > { %v3326_v26 = vpop.permute.xlu1 %1072  ;;  %v1363_v62 = vsel %vm1353_vm8, %v1319_v22, %v1071_v36 }
  0xdd   : > { %1257 = vrot.lane.b32.xlu0 %v3259_v47, %s2652_s10 }
  0xde   : > { %1259 = vrot.lane.b32.xlu1 %v3320_v8, %s2652_s10 }
  0xdf   : > { %v1106_v32 = vpop.permute.xlu0 %1105 }
  0xe0   : > { %v1108_v44 = vpop.permute.xlu1 %1107  ;;  %v1396_v37 = vsel %vm1386_vm9, %v1363_v62, %v1106_v32  ;;  %v1365_v32 = vsel %vm1353_vm8, %v1322_v40, %v3326_v26  ;;  %v264_v62 = vld [vmem:[%s2736_s30 + $0xc8] sm:$0x1] }
  0xe1   : > { %1292 = vrot.lane.b32.xlu0 %v3279_v60, %s2653_s11  ;;  %v1398_v10 = vsel %vm1386_vm9, %v1365_v32, %v1108_v44  ;;  %v3415_v44 = vld [vmem:[%s2736_s30 + $0xc0] sm:$0xf] }
  0xe2   : > { %1006 = vrot.lane.b32.xlu1 %v3259_v47, %s2649_s7  ;;  %v632_v47 = vshrl.u32 %v3344_v53, 16  ;;  %v822_v54 = vshll.u32 %v3415_v44, 16 }
  0xe3   : > { %v1141_v30 = vpop.permute.xlu0 %1140 }
  0xe4   : > { %v1143_v57 = vpop.permute.xlu1 %1142  ;;  %v634_v19 = vrot.slane %v632_v47, 4  ;;  %v1429_v36 = vsel %vm1419_vm10, %v1396_v37, %v1141_v30  ;;  %v3426_v47 = vld [vmem:[%s2736_s30 + $0xc4] sm:$0xf]  ;;  %v824_v29 = vrot.slane %v822_v54, 5 }
  0xe5   : > { %1294 = vrot.lane.b32.xlu0 %v3339_v51, %s2653_s11  ;;  %v1431_v30 = vsel %vm1419_vm10, %v1398_v10, %v1143_v57  ;;  %v3422_v57 = vcombine.low %v3344_v53, %v3347_v48  ;;  %v832_v48 = vshrl.u32 %v3426_v47, 16  ;;  %v828_v6 = vshll.u32 %v3426_v47, 16 }
  0xe6   : > { %1008 = vrot.lane.b32.xlu1 %v3320_v8, %s2649_s7  ;;  %v638_v50 = vor.u32 %v637_v7, %v634_v19  ;;  %v815_v19 = vrot.slane %v813_v61, 4  ;;  %v814_v53 = vsel %vm2758_vm4, %v2260_v17, %v813_v61 }
  0xe7   : > { %v1176_v63 = vpop.permute.xlu0 %1175  ;;  %v834_v22 = vrot.slane %v832_v48, 4 }
  0xe8   : > { %v1178_v14 = vpop.permute.xlu1 %1177  ;;  %v1462_v42 = vsel %vm1452_vm11, %v1429_v36, %v1176_v63  ;;  %v639_v4 = vrot.slane %v638_v50, 4  ;;  %v838_v50 = vshll.u32 %v264_v62, 16 }
  0xe9   : > { %1086 = vrot.lane.b32.xlu0 %v3279_v60, %s2648_s6  ;;  %v3372_v60 = vld [vmem:[%s2736_s30 + $0xbc] sm:$0x1]  ;;  %v1464_v58 = vsel %vm1452_vm11, %v1431_v30, %v1178_v14  ;;  %v819_v14 = vshrl.u32 %v3415_v44, 16  ;;  %v2311_v30 = vcombine.low %v3415_v44, %v3426_v47 }
  0xea   : > { %1088 = vrot.lane.b32.xlu1 %v3339_v51, %s2648_s6  ;;  %v651_v35 = vshll.u32 %v3372_v60, 16  ;;  %v644_v9 = vsel %vm2793_vm5, %v639_v4, %v643_v25 }
  0xeb   : > { %v1211_v5 = vpop.permute.xlu0 %1210  ;;  %v821_v25 = vrot.slane %v819_v14, 4  ;;  %v267_v14 = vld [vmem:[%s2736_s30 + $0xd4] sm:$0x1] }
  0xec   : > { %v1213_v0 = vpop.permute.xlu1 %1212  ;;  %v1495_v38 = vsel %vm1485_vm12, %v1462_v42, %v1211_v5  ;;  %v653_v21 = vrot.slane %v651_v35, 5  ;;  %v816_v5 = vrot.slane %v3372_v60, 5 }
  0xed   : > { %1121 = vrot.lane.b32.xlu0 %v3296_v16, %s2646_s4  ;;  %v1497_v59 = vsel %vm1485_vm12, %v1464_v58, %v1213_v0  ;;  %v830_v0 = vrot.slane %v828_v6, 5  ;;  %v825_v37 = vor.u32 %v824_v29, %v821_v25  ;;  %v872_v25 = vshll.u32 %v267_v14, 16 }
  0xee   : > { %1123 = vrot.lane.b32.xlu1 %v3362_v46, %s2646_s4  ;;  %v817_v60 = vsel %vm2758_vm4, %v815_v19, %v816_v5 }
  0xef   : > { %v1246_v27 = vpop.permute.xlu0 %1245  ;;  %v835_v23 = vor.u32 %v834_v22, %v830_v0  ;;  %v826_v42 = vrot.slane %v825_v37, 4 }
  0xf0   : > { %v1248_v55 = vpop.permute.xlu1 %1247  ;;  %v1528_v41 = vsel %vm1518_vm13, %v1495_v38, %v1246_v27  ;;  %v3464_v27 = vcombine.low %v814_v53, %v817_v60  ;;  %v840_v38 = vrot.slane %v838_v50, 5 }
  0xf1   : > { %1156 = vrot.lane.b32.xlu0 %v3320_v8, %s2650_s8  ;;  %v649_v8 = vrot.slane %v648_v15, 4  ;;  %v1530_v63 = vsel %vm1518_vm13, %v1497_v59, %v1248_v55  ;;  %v3469_v15 = vld [vmem:[%s2736_s30 + $0xcc] sm:$0xf]  ;;  %v3472_v55 = vld [vmem:[%s2736_s30 + $0xd0] sm:$0xf]  ;;  %v836_v32 = vrot.slane %v835_v23, 4 }
  0xf2   : > { %1158 = vrot.lane.b32.xlu1 %v3382_v31, %s2650_s8  ;;  %v856_v10 = vshll.u32 %v3469_v15, 16  ;;  %v2261_v59 = vrot.slane %v3415_v44, 9  ;;  %v874_v23 = vrot.slane %v872_v25, 5  ;;  %s2345_s30 = sshll.u32 %s2636_s15, 7 }
  0xf3   : > { %v1281_v24 = vpop.permute.xlu0 %1280  ;;  %v654_v43 = vsel %vm2793_vm5, %v649_v8, %v653_v21  ;;  %v853_v21 = vshrl.u32 %v3469_v15, 16  ;;  %v841_v58 = vsel %vm2793_vm5, %v836_v32, %v840_v38 }
  0xf4   : > { %v3407_v26 = vpop.permute.xlu1 %994  ;;  %v1561_v11 = vsel %vm1551_vm14, %v1528_v41, %v1281_v24  ;;  %v3445_v2 = vcombine.low %v644_v9, %v654_v43  ;;  %v866_v41 = vshrl.u32 %v3472_v55, 16  ;;  %v862_v24 = vshll.u32 %v3472_v55, 16 }
  0xf5   : > { %1191 = vrot.lane.b32.xlu0 %v3339_v51, %s2647_s5  ;;  %2379 = vmatprep.mubr.msk.bf16.mxu0 %vm1604_vm15, %v1561_v11  ;;  %v831_v11 = vsel %vm2793_vm5, %v826_v42, %v830_v0  ;;  %v855_v61 = vrot.slane %v853_v21, 4  ;;  %v850_v9 = vrot.slane %v264_v62, 5 }
  0xf6   : > { %1193 = vrot.lane.b32.xlu1 %v3402_v45, %s2647_s5  ;;  %v864_v43 = vrot.slane %v862_v24, 5  ;;  %v2312_v44 = vcombine.low %v831_v11, %v841_v58  ;;  %v884_v24 = vrot.slane %v267_v14, 5 }
  0xf7   : > { %v1283_v51 = vpop.permute.xlu0 %1282 }
  0xf8   : > { %v3433_v39 = vpop.permute.xlu1 %996  ;;  %v1563_v12 = vsel %vm1551_vm14, %v1530_v63, %v1283_v51  ;;  %v858_v63 = vrot.slane %v856_v10, 5 }
  0xf9   : > { %1226 = vrot.lane.b32.xlu0 %v3362_v46, %s2651_s9  ;;  %2380 = vmatmul.mubr.msk.bf16.gmra.mxu0 %vm1604_vm15, %v1563_v12  ;;  %v1328_v22 = vsel %vm1304_vm7, %v2988_v49, %v3433_v39 }
  0xfa   : > { %1228 = vrot.lane.b32.xlu1 %v3422_v57, %s2651_s9  ;;  %v859_v6 = vor.u32 %v858_v63, %v855_v61 }
  0xfb   : > { %v1075_v20 = vpop.permute.xlu0 %1074 }
  0xfc   : > { %v3449_v7 = vpop.permute.xlu1 %1076  ;;  %v860_v60 = vrot.slane %v859_v6, 4 }
  0xfd   : > { %1261 = vrot.lane.b32.xlu0 %v3382_v31, %s2652_s10  ;;  %v1369_v62 = vsel %vm1353_vm8, %v1328_v22, %v3449_v7 }
  0xfe   : > { %1263 = vrot.lane.b32.xlu1 %v3445_v2, %s2652_s10 }
  0xff   : > { %v1110_v33 = vpop.permute.xlu0 %1109 }
 0x100   : > { %v3460_v35 = vpop.permute.xlu1 %1111 }
 0x101   : > { %1296 = vrot.lane.b32.xlu0 %v3402_v45, %s2653_s11  ;;  %v1402_v50 = vsel %vm1386_vm9, %v1369_v62, %v3460_v35  ;;  %v2314_v35 = vcombine.low %v3469_v15, %v3472_v55 }
 0x102   : > { %1010 = vrot.lane.b32.xlu1 %v3382_v31, %s2649_s7  ;;  %v847_v31 = vrot.slane %v3426_v47, 5  ;;  %v868_v47 = vrot.slane %v866_v41, 4 }
 0x103   : > { %v1145_v36 = vpop.permute.xlu0 %1144 }
 0x104   : > { %v1147_v40 = vpop.permute.xlu1 %1146  ;;  %v849_v51 = vrot.slane %v847_v31, 4  ;;  %v848_v48 = vsel %vm2758_vm4, %v2261_v59, %v847_v31  ;;  %v869_v5 = vor.u32 %v868_v47, %v864_v43 }
 0x105   : > { %1298 = vrot.lane.b32.xlu0 %v3464_v27, %s2653_s11 }
 0x106   : > { %1012 = vrot.lane.b32.xlu1 %v3445_v2, %s2649_s7  ;;  %v851_v19 = vsel %vm2758_vm4, %v849_v51, %v850_v9  ;;  %v870_v37 = vrot.slane %v869_v5, 4 }
 0x107   : > { %v1180_v4 = vpop.permute.xlu0 %1179 }
 0x108   : > { %v1182_v8 = vpop.permute.xlu1 %1181  ;;  %v875_v21 = vsel %vm2793_vm5, %v870_v37, %v874_v23 }
 0x109   : > { %1090 = vrot.lane.b32.xlu0 %v3402_v45, %s2648_s6  ;;  %v1325_v45 = vsel %vm1304_vm7, %v2964_v28, %v3407_v26 }
 0x10a   : > { %1092 = vrot.lane.b32.xlu1 %v3464_v27, %s2648_s6  ;;  %v1367_v17 = vsel %vm1353_vm8, %v1325_v45, %v1075_v20  ;;  %v2313_v20 = vcombine.low %v848_v48, %v851_v19 }
 0x10b   : > { %v1215_v12 = vpop.permute.xlu0 %1214  ;;  %v1400_v29 = vsel %vm1386_vm9, %v1367_v17, %v1110_v33 }
 0x10c   : > { %v1217_v54 = vpop.permute.xlu1 %1216  ;;  %v1433_v26 = vsel %vm1419_vm10, %v1400_v29, %v1145_v36  ;;  %v881_v36 = vrot.slane %v3472_v55, 5 }
 0x10d   : > { %1125 = vrot.lane.b32.xlu0 %v3422_v57, %s2646_s4  ;;  %v1466_v53 = vsel %vm1452_vm11, %v1433_v26, %v1180_v4 }
 0x10e   : > { %1127 = vrot.lane.b32.xlu1 %v2311_v30, %s2646_s4  ;;  %v1499_v33 = vsel %vm1485_vm12, %v1466_v53, %v1215_v12  ;;  %v883_v41 = vrot.slane %v881_v36, 4  ;;  %s196_s4 = scalar_lea.vmem [#allocation2], %s2242_s29 }
 0x10f   : > { %v1250_v28 = vpop.permute.xlu0 %1249 }
 0x110   : > { %v1252_v0 = vpop.permute.xlu1 %1251  ;;  %v1532_v49 = vsel %vm1518_vm13, %v1499_v33, %v1250_v28  ;;  %v885_v58 = vsel %vm2758_vm4, %v883_v41, %v884_v24 }
 0x111   : > { %1160 = vrot.lane.b32.xlu0 %v3445_v2, %s2650_s8  ;;  %v1435_v2 = vsel %vm1419_vm10, %v1402_v50, %v1147_v40  ;;  %v865_v40 = vsel %vm2793_vm5, %v860_v60, %v864_v43 }
 0x112   : > { %1162 = vrot.lane.b32.xlu1 %v2312_v44, %s2650_s8  ;;  %v1468_v7 = vsel %vm1452_vm11, %v1435_v2, %v1182_v8  ;;  %v2315_v55 = vcombine.low %v865_v40, %v875_v21  ;;  %s3877_s8 = scalar_lea.hbm %s3973_s2, %s2345_s30 }
 0x113   : > { %v1285_v39 = vpop.permute.xlu0 %1284  ;;  %v1501_v38 = vsel %vm1485_vm12, %v1468_v7, %v1217_v54 }
 0x114   : > { %v999_v42 = vpop.permute.xlu1 %998  ;;  %v1565_v32 = vsel %vm1551_vm14, %v1532_v49, %v1285_v39  ;;  %v1534_v10 = vsel %vm1518_vm13, %v1501_v38, %v1252_v0 }
 0x115   : > { %1195 = vrot.lane.b32.xlu0 %v3464_v27, %s2647_s5  ;;  %2383 = vmatprep.mubr.msk.bf16.mxu0 %vm1604_vm15, %v1565_v32  ;;  %v2262_v27 = vrot.slane %v3469_v15, 9  ;;  %v1331_v13 = vsel %vm1304_vm7, %v3024_v3, %v999_v42 }
 0x116   : > { %1197 = vrot.lane.b32.xlu1 %v2313_v20, %s2647_s5  ;;  %s2104_s5 = sshll.u32 %s196_s4, 4  ;;  %s3879_s5 = int_to_ptr.vmem [resolvable:$true] %s2104_s5 }
 0x117   : > { %v1287_v31 = vpop.permute.xlu0 %1286  ;;  %v882_v52 = vsel %vm2758_vm4, %v2262_v27, %v881_v36 }
 0x118   : > { %v1001_v4 = vpop.permute.xlu1 %1000  ;;  %v1567_v8 = vsel %vm1551_vm14, %v1534_v10, %v1287_v31  ;;  %v2316_v59 = vcombine.low %v882_v52, %v885_v58 }
 0x119   : > { %1230 = vrot.lane.b32.xlu0 %v2311_v30, %s2651_s9  ;;  %2384 = vmatmul.mubr.msk.bf16.gmra.mxu0 %vm1604_vm15, %v1567_v8  ;;  %v1334_v6 = vsel %vm1304_vm7, %v3053_v56, %v1001_v4 }
 0x11a   : > { %1232 = vrot.lane.b32.xlu1 %v2314_v35, %s2651_s9  ;;  %s2083_s9 = scalar_lea.sflag [#allocation3], %s3852_s28 }
 0x11b   : > { %v1079_v11 = vpop.permute.xlu0 %1078 }
 0x11c   : > { %v1081_v15 = vpop.permute.xlu1 %1080  ;;  %v1371_v14 = vsel %vm1353_vm8, %v1331_v13, %v1079_v11 }
 0x11d   : > { %1265 = vrot.lane.b32.xlu0 %v2312_v44, %s2652_s10  ;;  %v1373_v19 = vsel %vm1353_vm8, %v1334_v6, %v1081_v15 }
 0x11e   : > { %1267 = vrot.lane.b32.xlu1 %v2315_v55, %s2652_s10  ;;  %s2538_s10 = scalar_lea.vmem %s3879_s5, 128 }
 0x11f   : > { %v1114_v61 = vpop.permute.xlu0 %1113  ;;  %p2539_p12 = scmp.ne.s32.totalorder %s3879_s5, %s2538_s10 }
 0x120   : > { %v1116_v30 = vpop.permute.xlu1 %1115  ;;  %v1404_v54 = vsel %vm1386_vm9, %v1371_v14, %v1114_v61 }
 0x121   : > { %1300 = vrot.lane.b32.xlu0 %v2313_v20, %s2653_s11  ;;  %v1406_v25 = vsel %vm1386_vm9, %v1373_v19, %v1116_v30  ;;  %p2540_p13 = pnand %p2539_p12, %p2716_p4 }
 0x122   : > { %1302 = vrot.lane.b32.xlu1 %v2316_v59, %s2653_s11  ;;  %s2654_s11 = smov [#allocation2]  }
 0x123   : > { %v1149_v63 = vpop.permute.xlu0 %1148  ;;  %p2541_p0 = pneg %p2540_p13  ;;  %s2542_s18 = sshll.u32 %s2654_s11, 4  ;;  %s2543_s18 = int_to_ptr.vmem [resolvable:$false] %s2542_s18 }
 0x124   : > { %v1151_v51 = vpop.permute.xlu1 %1150  ;;  %v1437_v44 = vsel %vm1419_vm10, %v1404_v54, %v1149_v63  ;;  %s2544_s19 = scalar_lea.vmem %s2543_s18, 256  ;;  %p2545_p1 = scmp.lt.s32.totalorder %s3879_s5, %s2543_s18 }
 0x125   : > { %v1439_v28 = vsel %vm1419_vm10, %v1406_v25, %v1151_v51  ;;  %p2546_p2 = scmp.lt.s32.totalorder %s2544_s19, %s2538_s10 }
 0x127   : > { %v1184_v9 = vpop.permute.xlu0 %1183  ;;  %p2547_p3 = por %p2546_p2, %p2545_p1 }
 0x128   : > { %v1186_v43 = vpop.permute.xlu1 %1185  ;;  %v1470_v17 = vsel %vm1452_vm11, %v1437_v44, %v1184_v9 }
 0x129   : > { %v1472_v22 = vsel %vm1452_vm11, %v1439_v28, %v1186_v43  ;;  %p2548_p5 = pnand %p2547_p3, %p2541_p0 }
 0x12b   : > { %v1219_v47 = vpop.permute.xlu0 %1218 }
 0x12c   : > { %v1221_v12 = vpop.permute.xlu1 %1220  ;;  %v1503_v5 = vsel %vm1485_vm12, %v1470_v17, %v1219_v47 }
 0x12d   : > { %v1505_v56 = vsel %vm1485_vm12, %v1472_v22, %v1221_v12 }
 0x12f   : > { %v1254_v45 = vpop.permute.xlu0 %1253 }
 0x130   : > { %v1256_v48 = vpop.permute.xlu1 %1255  ;;  %v1536_v3 = vsel %vm1518_vm13, %v1503_v5, %v1254_v45 }
 0x131   : > { %v1538_v53 = vsel %vm1518_vm13, %v1505_v56, %v1256_v48 }
 0x133   : > { %v1289_v29 = vpop.permute.xlu0 %1288 }
 0x134   : > { %v1003_v26 = vpop.permute.xlu1 %1002  ;;  %v1569_v0 = vsel %vm1551_vm14, %v1536_v3, %v1289_v29 }
 0x135   : > { %2387 = vmatprep.mubr.msk.bf16.mxu1 %vm1604_vm15, %v1569_v0  ;;  %v1337_v7 = vsel %vm1304_vm7, %v3119_v18, %v1003_v26 }
 0x137   : > { %v1291_v20 = vpop.permute.xlu0 %1290 }
 0x138   : > { %v1005_v60 = vpop.permute.xlu1 %1004  ;;  %v1571_v62 = vsel %vm1551_vm14, %v1538_v53, %v1291_v20 }
 0x139   : > { %2388 = vmatmul.mubr.msk.bf16.vlgmr.msra.gmra.mxu1 %vm1604_vm15, %v1571_v62  ;;  %v1340_v31 = vsel %vm1304_vm7, %v3173_v34, %v1005_v60 }
 0x13b   : > { %v1083_v33 = vpop.permute.xlu0 %1082 }
 0x13c   : > { %v1085_v37 = vpop.permute.xlu1 %1084  ;;  %v1375_v38 = vsel %vm1353_vm8, %v1337_v7, %v1083_v33 }
 0x13d   : > { %v1377_v41 = vsel %vm1353_vm8, %v1340_v31, %v1085_v37 }
 0x13f   : > { %v1118_v23 = vpop.permute.xlu0 %1117 }
 0x140   : > { %v1120_v50 = vpop.permute.xlu1 %1119  ;;  %v1408_v35 = vsel %vm1386_vm9, %v1375_v38, %v1118_v23 }
 0x141   : > { %v1410_v4 = vsel %vm1386_vm9, %v1377_v41, %v1120_v50 }
 0x143   : > { %v1153_v49 = vpop.permute.xlu0 %1152 }
 0x144   : > { %v1155_v39 = vpop.permute.xlu1 %1154  ;;  %v1441_v21 = vsel %vm1419_vm10, %v1408_v35, %v1153_v49 }
 0x145   : > { %v1443_v55 = vsel %vm1419_vm10, %v1410_v4, %v1155_v39 }
 0x147   : > { %v1188_v36 = vpop.permute.xlu0 %1187 }
 0x148   : > { %v1190_v2 = vpop.permute.xlu1 %1189  ;;  %v1474_v27 = vsel %vm1452_vm11, %v1441_v21, %v1188_v36 }
 0x149   : > { %v1476_v58 = vsel %vm1452_vm11, %v1443_v55, %v1190_v2 }
 0x14b   : > { %v1223_v42 = vpop.permute.xlu0 %1222 }
 0x14c   : > { %v1225_v32 = vpop.permute.xlu1 %1224  ;;  %v1507_v24 = vsel %vm1485_vm12, %v1474_v27, %v1223_v42 }
 0x14d   : > { %v1509_v34 = vsel %vm1485_vm12, %v1476_v58, %v1225_v32 }
 0x14f   : > { %v1258_v40 = vpop.permute.xlu0 %1257 }
 0x150   : > { %v1260_v10 = vpop.permute.xlu1 %1259  ;;  %v1540_v18 = vsel %vm1518_vm13, %v1507_v24, %v1258_v40 }
 0x151   : > { %v1542_v15 = vsel %vm1518_vm13, %v1509_v34, %v1260_v10 }
 0x153   : > { %v1293_v8 = vpop.permute.xlu0 %1292 }
 0x154   : > { %v1007_v11 = vpop.permute.xlu1 %1006  ;;  %v1573_v52 = vsel %vm1551_vm14, %v1540_v18, %v1293_v8 }
 0x155   : > { %2391 = vmatprep.mubr.msk.bf16.mxu1 %vm1604_vm15, %v1573_v52  ;;  %v1343_v44 = vsel %vm1304_vm7, %v3239_v1, %v1007_v11 }
 0x157   : > { %v1295_v59 = vpop.permute.xlu0 %1294 }
 0x158   : > { %v1009_v61 = vpop.permute.xlu1 %1008  ;;  %v1575_v30 = vsel %vm1551_vm14, %v1542_v15, %v1295_v59 }
 0x159   : > { %2392 = vmatmul.mubr.msk.bf16.gmra.mxu1 %vm1604_vm15, %v1575_v30  ;;  %v1346_v25 = vsel %vm1304_vm7, %v3296_v16, %v1009_v61 }
 0x15b   : > { %v1087_v63 = vpop.permute.xlu0 %1086 }
 0x15c   : > { %v1089_v51 = vpop.permute.xlu1 %1088  ;;  %v1379_v48 = vsel %vm1353_vm8, %v1343_v44, %v1087_v63 }
 0x15d   : > { %v1381_v29 = vsel %vm1353_vm8, %v1346_v25, %v1089_v51 }
 0x15f   : > { %v1122_v9 = vpop.permute.xlu0 %1121 }
 0x160   : > { %v1124_v43 = vpop.permute.xlu1 %1123  ;;  %v1412_v6 = vsel %vm1386_vm9, %v1379_v48, %v1122_v9 }
 0x161   : > { %v1414_v26 = vsel %vm1386_vm9, %v1381_v29, %v1124_v43 }
 0x163   : > { %v1157_v47 = vpop.permute.xlu0 %1156 }
 0x164   : > { %v1159_v12 = vpop.permute.xlu1 %1158  ;;  %v1445_v19 = vsel %vm1419_vm10, %v1412_v6, %v1157_v47 }
 0x165   : > { %v1447_v22 = vsel %vm1419_vm10, %v1414_v26, %v1159_v12 }
 0x167   : > { %v1192_v13 = vpop.permute.xlu0 %1191 }
 0x168   : > { %v1194_v14 = vpop.permute.xlu1 %1193  ;;  %v1478_v3 = vsel %vm1452_vm11, %v1445_v19, %v1192_v13 }
 0x169   : > { %v1480_v20 = vsel %vm1452_vm11, %v1447_v22, %v1194_v14 }
 0x16b   : > { %v1227_v54 = vpop.permute.xlu0 %1226 }
 0x16c   : > { %v1229_v45 = vpop.permute.xlu1 %1228  ;;  %v1511_v28 = vsel %vm1485_vm12, %v1478_v3, %v1227_v54 }
 0x16d   : > { %v1513_v16 = vsel %vm1485_vm12, %v1480_v20, %v1229_v45 }
 0x16f   : > { %v1262_v17 = vpop.permute.xlu0 %1261 }
 0x170   : > { %v1264_v5 = vpop.permute.xlu1 %1263  ;;  %v1544_v1 = vsel %vm1518_vm13, %v1511_v28, %v1262_v17 }
 0x171   : > { %v1546_v60 = vsel %vm1518_vm13, %v1513_v16, %v1264_v5 }
 0x173   : > { %v1297_v0 = vpop.permute.xlu0 %1296 }
 0x174   : > { %v1011_v56 = vpop.permute.xlu1 %1010  ;;  %v1577_v53 = vsel %vm1551_vm14, %v1544_v1, %v1297_v0 }
 0x175   : > { %2395 = vmatprep.mubr.msk.bf16.mxu1 %vm1604_vm15, %v1577_v53  ;;  %v1349_v35 = vsel %vm1304_vm7, %v3362_v46, %v1011_v56 }
 0x177   : > { %v1299_v62 = vpop.permute.xlu0 %1298 }
 0x178   : > { %v1013_v33 = vpop.permute.xlu1 %1012  ;;  %v1579_v37 = vsel %vm1551_vm14, %v1546_v60, %v1299_v62 }
 0x179   : > { %2396 = vmatmul.mubr.msk.bf16.gmra.mxu1 %vm1604_vm15, %v1579_v37  ;;  %v1352_v40 = vsel %vm1304_vm7, %v3422_v57, %v1013_v33  ;;  %v3630_v61 = vpop.f32.mrf.mxu0 }
 0x17a   : > { %v1805_v3 = vsel %vm1353_vm8, %v3630_v61, 0.0 }
 0x17b   : > { %v1091_v23 = vpop.permute.xlu0 %1090  ;;  %v3632_v30 = vpop.f32.mrf.mxu0 }
 0x17c   : > { %v1093_v50 = vpop.permute.xlu1 %1092  ;;  %v1383_v21 = vsel %vm1353_vm8, %v1349_v35, %v1091_v23  ;;  %v1802_v19 = vsel %vm1353_vm8, %v3632_v30, 0.0 }
 0x17d   : > { %v1385_v10 = vsel %vm1353_vm8, %v1352_v40, %v1093_v50  ;;  %v3636_v51 = vpop.f32.mrf.mxu0 }
 0x17e   : > { %v1807_v26 = vsel %vm1353_vm8, %v3636_v51, 0.0 }
 0x17f   : > { %v1126_v49 = vpop.permute.xlu0 %1125  ;;  %v3644_v12 = vpop.f32.mrf.mxu0 }
 0x180   : > { %v1128_v39 = vpop.permute.xlu1 %1127  ;;  %v1416_v31 = vsel %vm1386_vm9, %v1383_v21, %v1126_v49  ;;  %v1803_v48 = vsel %vm1353_vm8, %v3644_v12, 0.0 }
 0x181   : > { %v1418_v41 = vsel %vm1386_vm9, %v1385_v10, %v1128_v39  ;;  %v1804_v5 = vadd.f32 %v1803_v48, %v1802_v19 }
 0x183   : > { %v1161_v36 = vpop.permute.xlu0 %1160  ;;  %v1806_v29 = vadd.f32 %v1805_v3, %v1804_v5 }
 0x184   : > { %v1163_v2 = vpop.permute.xlu1 %1162  ;;  %v1449_v24 = vsel %vm1419_vm10, %v1416_v31, %v1161_v36 }
 0x185   : > { %v1451_v18 = vsel %vm1419_vm10, %v1418_v41, %v1163_v2  ;;  %v1808_v0 = vadd.f32 %v1807_v26, %v1806_v29 }
 0x187   : > { %v1196_v42 = vpop.permute.xlu0 %1195 }
 0x188   : > { %v1198_v32 = vpop.permute.xlu1 %1197  ;;  %v1482_v8 = vsel %vm1452_vm11, %v1449_v24, %v1196_v42 }
 0x189   : > { %v1484_v46 = vsel %vm1452_vm11, %v1451_v18, %v1198_v32 }
 0x18b   : > { %v1231_v7 = vpop.permute.xlu0 %1230 }
 0x18c   : > { %v1233_v38 = vpop.permute.xlu1 %1232  ;;  %v1515_v57 = vsel %vm1485_vm12, %v1482_v8, %v1231_v7 }
 0x18d   : > { %v1517_v55 = vsel %vm1485_vm12, %v1484_v46, %v1233_v38 }
 0x18f   : > { %v1266_v27 = vpop.permute.xlu0 %1265 }
 0x190   : > { %v1268_v4 = vpop.permute.xlu1 %1267  ;;  %v1548_v11 = vsel %vm1518_vm13, %v1515_v57, %v1266_v27 }
 0x191   : > { %v1550_v58 = vsel %vm1518_vm13, %v1517_v55, %v1268_v4 }
 0x193   : > { %v1301_v52 = vpop.permute.xlu0 %1300 }
 0x194   : > { %v1303_v34 = vpop.permute.xlu1 %1302  ;;  %v1581_v15 = vsel %vm1551_vm14, %v1548_v11, %v1301_v52 }
 0x195   : > { %v1583_v59 = vsel %vm1551_vm14, %v1550_v58, %v1303_v34  ;;  %2399 = vmatprep.mubr.msk.bf16.mxu1 %vm1604_vm15, %v1581_v15 }
 0x196   : > { %2400 = vmatmul.mubr.msk.bf16.gmra.mxu1 %vm1604_vm15, %v1583_v59 }
 0x199   : > { %v3648_v14 = vpop.f32.mrf.mxu0 }
 0x19a   : > { %v1813_v60 = vsel %vm1353_vm8, %v3648_v14, 0.0 }
 0x19b   : > { %v3652_v45 = vpop.f32.mrf.mxu0 }
 0x19c   : > { %v1809_v1 = vsel %vm1353_vm8, %v3652_v45, 0.0 }
 0x19d   : > { %v3658_v6 = vpop.f32.mrf.mxu0  ;;  %v1810_v53 = vadd.f32 %v1809_v1, %v1808_v0 }
 0x19e   : > { %v1815_v39 = vsel %vm1353_vm8, %v3658_v6, 0.0 }
 0x19f   : > { %v3664_v25 = vpop.f32.mrf.mxu0 }
 0x1a0   : > { %v1811_v56 = vsel %vm1353_vm8, %v3664_v25, 0.0 }
 0x1a1   : > { %v1812_v20 = vadd.f32 %v1811_v56, %v1810_v53 }
 0x1a3   : > { %v1814_v33 = vadd.f32 %v1813_v60, %v1812_v20 }
 0x1a5   : > { %v1816_v42 = vadd.f32 %v1815_v39, %v1814_v33 }
 0x1b9   : > { %v3668_v28 = vpop.f32.mrf.mxu0 }
 0x1ba   : > { %v1821_v27 = vsel %vm1353_vm8, %v3668_v28, 0.0 }
 0x1bb   : > { %v3674_v22 = vpop.f32.mrf.mxu0 }
 0x1bc   : > { %v1817_v36 = vsel %vm1353_vm8, %v3674_v22, 0.0 }
 0x1bd   : > { %v3678_v16 = vpop.f32.mrf.mxu0  ;;  %v1818_v38 = vadd.f32 %v1817_v36, %v1816_v42 }
 0x1be   : > { %v1823_v18 = vsel %vm1353_vm8, %v3678_v16, 0.0 }
 0x1bf   : > { %v3684_v37 = vpop.f32.mrf.mxu0 }
 0x1c0   : > { %v1819_v32 = vsel %vm1353_vm8, %v3684_v37, 0.0 }
 0x1c1   : > { %v1820_v21 = vadd.f32 %v1819_v32, %v1818_v38 }
 0x1c3   : > { %v1822_v41 = vadd.f32 %v1821_v27, %v1820_v21 }
 0x1c5   : > { %v1824_v46 = vadd.f32 %v1823_v18, %v1822_v41 }
 0x1d9   : > { %v3688_v50 = vpop.f32.mrf.mxu0 }
 0x1da   : > { %v1829_v52 = vsel %vm1353_vm8, %v3688_v50, 0.0 }
 0x1db   : > { %v3702_v35 = vpop.f32.mrf.mxu0 }
 0x1dc   : > { %v1825_v8 = vsel %vm1353_vm8, %v3702_v35, 0.0 }
 0x1dd   : > { %v3706_v10 = vpop.f32.mrf.mxu0  ;;  %v1826_v55 = vadd.f32 %v1825_v8, %v1824_v46 }
 0x1de   : > { %v1831_v34 = vsel %vm1353_vm8, %v3706_v10, 0.0 }
 0x1df   : > { %v3712_v24 = vpop.f32.mrf.mxu0 }
 0x1e0   : > { %v1827_v57 = vsel %vm1353_vm8, %v3712_v24, 0.0 }
 0x1e1   : > { %v1828_v11 = vadd.f32 %v1827_v57, %v1826_v55 }
 0x1e3   : > { %v1830_v58 = vadd.f32 %v1829_v52, %v1828_v11 }
 0x1e5   : > { %v1832_v59 = vadd.f32 %v1831_v34, %v1830_v58 }
 0x1f9   : > { %v3634_v63 = vpop.f32.mrf.mxu1 }
 0x1fa   : > { %v2484_v44 = vpack.i.bf16 %v3634_v63, %v3630_v61  ;;  %v1837_v5 = vsel %vm1353_vm8, %v3634_v63, 0.0 }
 0x1fb   : > { %v3638_v9 = vpop.f32.mrf.mxu1 }
 0x1fc   : > { %v2480_v43 = vpack.i.bf16 %v3638_v9, %v3632_v30  ;;  %v1833_v15 = vsel %vm1353_vm8, %v3638_v9, 0.0 }
 0x1fd   : > { %v3642_v47 = vpop.f32.mrf.mxu1 }
 0x1fe   : > { %2481 = vxpose.xlu0.b32.start [1/16] (narrow) %v2480_v43, 8  ;;  %v2486_v17 = vpack.i.bf16 %v3642_v47, %v3636_v51  ;;  %v1839_v0 = vsel %vm1353_vm8, %v3642_v47, 0.0 }
 0x1ff   : > { %v3646_v13 = vpop.f32.mrf.mxu1 }
 0x200   : > { %v2482_v54 = vpack.i.bf16 %v3646_v13, %v3644_v12  ;;  %v1835_v43 = vsel %vm1353_vm8, %v3646_v13, 0.0 }
 0x202   : > { %2483 = vxpose.xlu0.b32.cont [2/16] (narrow) %v2482_v54, 8  ;;  %v1834_v54 = vadd.f32 %v1833_v15, %v1832_v59 }
 0x204   : > { %v1836_v48 = vadd.f32 %v1835_v43, %v1834_v54 }
 0x206   : > { %2485 = vxpose.xlu0.b32.cont [3/16] (narrow) %v2484_v44, 8  ;;  %v1838_v29 = vadd.f32 %v1837_v5, %v1836_v48 }
 0x208   : > { %v1840_v53 = vadd.f32 %v1839_v0, %v1838_v29 }
 0x20a   : > { %2487 = vxpose.xlu0.b32.cont [4/16] (narrow) %v2486_v17, 8 }
 0x219   : > { %v3682_v62 = vpop.f32.mrf.mxu1 }
 0x21a   : > { %v2492_v31 = vpack.i.bf16 %v3682_v62, %v3648_v14  ;;  %v1845_v36 = vsel %vm1353_vm8, %v3682_v62, 0.0 }
 0x21b   : > { %v3686_v23 = vpop.f32.mrf.mxu1 }
 0x21c   : > { %v2488_v49 = vpack.i.bf16 %v3686_v23, %v3652_v45  ;;  %v1841_v56 = vsel %vm1353_vm8, %v3686_v23, 0.0 }
 0x21d   : > { %v3696_v2 = vpop.f32.mrf.mxu1  ;;  %v1842_v60 = vadd.f32 %v1841_v56, %v1840_v53 }
 0x21e   : > { %2489 = vxpose.xlu0.b32.cont [5/16] (narrow) %v2488_v49, 8  ;;  %v2494_v4 = vpack.i.bf16 %v3696_v2, %v3658_v6  ;;  %v1847_v32 = vsel %vm1353_vm8, %v3696_v2, 0.0 }
 0x21f   : > { %v3700_v7 = vpop.f32.mrf.mxu1 }
 0x220   : > { %v2490_v40 = vpack.i.bf16 %v3700_v7, %v3664_v25  ;;  %v1843_v20 = vsel %vm1353_vm8, %v3700_v7, 0.0 }
 0x221   : > { %v1844_v49 = vadd.f32 %v1843_v20, %v1842_v60 }
 0x222   : > { %2491 = vxpose.xlu0.b32.cont [6/16] (narrow) %v2490_v40, 8 }
 0x223   : > { %v1846_v42 = vadd.f32 %v1845_v36, %v1844_v49 }
 0x225   : > { %v1848_v40 = vadd.f32 %v1847_v32, %v1846_v42 }
 0x226   : > { %2493 = vxpose.xlu0.b32.cont [7/16] (narrow) %v2492_v31, 8 }
 0x22a   : > { %2495 = vxpose.xlu0.b32.cont [8/16] (narrow) %v2494_v4, 8 }
 0x239   : > { %v3730_v44 = vpop.f32.mrf.mxu1 }
 0x23a   : > { %v2500_v33 = vpack.i.bf16 %v3730_v44, %v3668_v28  ;;  %v1853_v41 = vsel %vm1353_vm8, %v3730_v44, 0.0 }
 0x23b   : > { %v3732_v17 = vpop.f32.mrf.mxu1 }
 0x23c   : > { %v2496_v19 = vpack.i.bf16 %v3732_v17, %v3674_v22  ;;  %v1849_v38 = vsel %vm1353_vm8, %v3732_v17, 0.0 }
 0x23d   : > { %v3738_v3 = vpop.f32.mrf.mxu1  ;;  %v1850_v31 = vadd.f32 %v1849_v38, %v1848_v40 }
 0x23e   : > { %2497 = vxpose.xlu0.b32.cont [9/16] (narrow) %v2496_v19, 8  ;;  %v2502_v39 = vpack.i.bf16 %v3738_v3, %v3678_v16  ;;  %v1855_v46 = vsel %vm1353_vm8, %v3738_v3, 0.0 }
 0x23f   : > { %v3740_v26 = vpop.f32.mrf.mxu1 }
 0x240   : > { %v2498_v1 = vpack.i.bf16 %v3740_v26, %v3684_v37  ;;  %v1851_v21 = vsel %vm1353_vm8, %v3740_v26, 0.0 }
 0x241   : > { %v1852_v27 = vadd.f32 %v1851_v21, %v1850_v31 }
 0x242   : > { %2499 = vxpose.xlu0.b32.cont [10/16] (narrow) %v2498_v1, 8 }
 0x243   : > { %v1854_v4 = vadd.f32 %v1853_v41, %v1852_v27 }
 0x245   : > { %v1856_v11 = vadd.f32 %v1855_v46, %v1854_v4 }
 0x246   : > { %2501 = vxpose.xlu0.b32.cont [11/16] (narrow) %v2500_v33, 8 }
 0x24a   : > { %2503 = vxpose.xlu0.b32.cont [12/16] (narrow) %v2502_v39, 8 }
 0x256   : > { %v3764_v18 = vpop.f32.mrf.mxu1 }
 0x257   : > { %v1861_v54 = vsel %vm1353_vm8, %v3764_v18, 0.0  ;;  %v2508_v19 = vpack.i.bf16 %v3764_v18, %v3688_v50 }
 0x258   : > { %v3766_v8 = vpop.f32.mrf.mxu1 }
 0x259   : > { %v2504_v57 = vpack.i.bf16 %v3766_v8, %v3702_v35  ;;  %v1857_v55 = vsel %vm1353_vm8, %v3766_v8, 0.0 }
 0x25a   : > { %v3774_v52 = vpop.f32.mrf.mxu1  ;;  %v1858_v58 = vadd.f32 %v1857_v55, %v1856_v11 }
 0x25b   : > { %2505 = vxpose.xlu0.b32.cont [13/16] (narrow) %v2504_v57, 8  ;;  %v1863_v5 = vsel %vm1353_vm8, %v3774_v52, 0.0  ;;  %v2510_v0 = vpack.i.bf16 %v3774_v52, %v3706_v10 }
 0x25c   : > { %v3776_v34 = vpop.f32.mrf.mxu1 }
 0x25d   : > { %v2506_v15 = vpack.i.bf16 %v3776_v34, %v3712_v24  ;;  %v1859_v59 = vsel %vm1353_vm8, %v3776_v34, 0.0 }
 0x25e   : > { %v1860_v43 = vadd.f32 %v1859_v59, %v1858_v58 }
 0x25f   : > { %2507 = vxpose.xlu0.b32.cont [14/16] (narrow) %v2506_v15, 8 }
 0x260   : > { %v1862_v48 = vadd.f32 %v1861_v54, %v1860_v43 }
 0x262   : > { %v1864_v29 = vadd.f32 %v1863_v5, %v1862_v48 }
 0x263   : > { %2509 = vxpose.xlu0.b32.cont [15/16] (narrow) %v2508_v19, 8 }
 0x264   : > { %v1865_v1 = vrot.slane %v1864_v29, 4 }
 0x266   : > { %v1866_v56 = vadd.f32 %v1865_v1, %v1864_v29 }
 0x267   : > { %2511 = vxpose.xlu0.b32.end [16/16] (narrow) %v2510_v0, 8 }
 0x268   : > { %v1867_v53 = vrot.slane %v1866_v56, 2 }
 0x26a   : > { %v1868_v20 = vadd.f32 %v1867_v53, %v1866_v56 }
 0x26c   : > { %v1869_v60 = vrot.slane %v1868_v20, 1 }
 0x26e   : > { %v3790_v33 = vadd.f32 %v1869_v60, %v1868_v20 }
 0x270   : > { %v3793_v49 = vmul.f32 0.00390625, %v3790_v33 }
 0x272   : > { %v1872_v39 = vsub.f32 %v3632_v30, %v3793_v49  ;;  %v1873_v36 = vsub.f32 %v3644_v12, %v3793_v49  ;;  %v1874_v42 = vsub.f32 %v3630_v61, %v3793_v49  ;;  %v1875_v32 = vsub.f32 %v3636_v51, %v3793_v49 }
 0x273   : > { %v1876_v21 = vsub.f32 %v3652_v45, %v3793_v49  ;;  %v1877_v27 = vsub.f32 %v3664_v25, %v3793_v49  ;;  %v1878_v61 = vsub.f32 %v3648_v14, %v3793_v49  ;;  %v1879_v45 = vsub.f32 %v3658_v6, %v3793_v49 }
 0x274   : > { %v1904_v38 = vmul.f32 %v1872_v39, %v1872_v39  ;;  %v1905_v40 = vmul.f32 %v1873_v36, %v1873_v36  ;;  %v1906_v31 = vmul.f32 %v1874_v42, %v1874_v42  ;;  %v1907_v41 = vmul.f32 %v1875_v32, %v1875_v32 }
 0x275   : > { %v1908_v46 = vmul.f32 %v1876_v21, %v1876_v21  ;;  %v1909_v55 = vmul.f32 %v1877_v27, %v1877_v27  ;;  %v1880_v58 = vsub.f32 %v3674_v22, %v3793_v49  ;;  %v1910_v15 = vmul.f32 %v1878_v61, %v1878_v61 }
 0x276   : > { %v1936_v30 = vsel %vm1353_vm8, %v1904_v38, 0.0  ;;  %v1937_v12 = vsel %vm1353_vm8, %v1905_v40, 0.0  ;;  %v1939_v51 = vsel %vm1353_vm8, %v1906_v31, 0.0  ;;  %v1941_v11 = vsel %vm1353_vm8, %v1907_v41, 0.0 }
 0x277   : > { %v1938_v4 = vadd.f32 %v1937_v12, %v1936_v30  ;;  %v1943_v59 = vsel %vm1353_vm8, %v1908_v46, 0.0  ;;  %v1881_v14 = vsub.f32 %v3684_v37, %v3793_v49  ;;  %v1911_v54 = vmul.f32 %v1879_v45, %v1879_v45 }
 0x278   : > { %v1945_v48 = vsel %vm1353_vm8, %v1909_v55, 0.0  ;;  %v1882_v6 = vsub.f32 %v3668_v28, %v3793_v49  ;;  %v1912_v5 = vmul.f32 %v1880_v58, %v1880_v58  ;;  %v1947_v29 = vsel %vm1353_vm8, %v1910_v15, 0.0 }
 0x279   : > { %v1940_v57 = vadd.f32 %v1939_v51, %v1938_v4  ;;  %v1883_v22 = vsub.f32 %v3678_v16, %v3793_v49  ;;  %v1913_v0 = vmul.f32 %v1881_v14, %v1881_v14  ;;  %v1949_v56 = vsel %vm1353_vm8, %v1911_v54, 0.0 }
 0x27a   : > { %v1884_v37 = vsub.f32 %v3702_v35, %v3793_v49  ;;  %v1914_v20 = vmul.f32 %v1882_v6, %v1882_v6  ;;  %v1951_v60 = vsel %vm1353_vm8, %v1912_v5, 0.0  ;;  %v1885_v28 = vsub.f32 %v3712_v24, %v3793_v49 }
 0x27b   : > { %v1942_v25 = vadd.f32 %v1941_v11, %v1940_v57  ;;  %v1915_v36 = vmul.f32 %v1883_v22, %v1883_v22  ;;  %v1953_v42 = vsel %vm1353_vm8, %v1913_v0, 0.0  ;;  %v1886_v16 = vsub.f32 %v3688_v50, %v3793_v49 }
 0x27c   : > { %v1916_v38 = vmul.f32 %v1884_v37, %v1884_v37  ;;  %v1955_v40 = vsel %vm1353_vm8, %v1914_v20, 0.0  ;;  %v1887_v35 = vsub.f32 %v3706_v10, %v3793_v49  ;;  %v1917_v31 = vmul.f32 %v1885_v28, %v1885_v28 }
 0x27d   : > { %v1944_v43 = vadd.f32 %v1943_v59, %v1942_v25  ;;  %v1957_v27 = vsel %vm1353_vm8, %v1915_v36, 0.0  ;;  %v1888_v24 = vsub.f32 %v3638_v9, %v3793_v49  ;;  %v1918_v30 = vmul.f32 %v1886_v16, %v1886_v16 }
 0x27e   : > { %v1959_v12 = vsel %vm1353_vm8, %v1916_v38, 0.0  ;;  %v1889_v50 = vsub.f32 %v3646_v13, %v3793_v49  ;;  %v1919_v61 = vmul.f32 %v1887_v35, %v1887_v35  ;;  %v1961_v46 = vsel %vm1353_vm8, %v1917_v31, 0.0 }
 0x27f   : > { %v1946_v19 = vadd.f32 %v1945_v48, %v1944_v43  ;;  %v1890_v10 = vsub.f32 %v3634_v63, %v3793_v49  ;;  %v1920_v57 = vmul.f32 %v1888_v24, %v1888_v24  ;;  %v1963_v45 = vsel %vm1353_vm8, %v1918_v30, 0.0 }
 0x280   : > { %v1891_v9 = vsub.f32 %v3642_v47, %v3793_v49  ;;  %v1921_v11 = vmul.f32 %v1889_v50, %v1889_v50  ;;  %v1965_v25 = vsel %vm1353_vm8, %v1919_v61, 0.0  ;;  %v1892_v13 = vsub.f32 %v3686_v23, %v3793_v49 }
 0x281   : > { %v1948_v1 = vadd.f32 %v1947_v29, %v1946_v19  ;;  %v1922_v15 = vmul.f32 %v1890_v10, %v1890_v10  ;;  %v1967_v63 = vsel %vm1353_vm8, %v1920_v57, 0.0  ;;  %v1893_v43 = vsub.f32 %v3700_v7, %v3793_v49 }
 0x282   : > { %v1923_v47 = vmul.f32 %v1891_v9, %v1891_v9  ;;  %v1969_v14 = vsel %vm1353_vm8, %v1921_v11, 0.0  ;;  %v1894_v54 = vsub.f32 %v3682_v62, %v3793_v49  ;;  %v1924_v48 = vmul.f32 %v1892_v13, %v1892_v13 }
 0x283   : > { %v1950_v53 = vadd.f32 %v1949_v56, %v1948_v1  ;;  %v1971_v23 = vsel %vm1353_vm8, %v1922_v15, 0.0  ;;  %v1895_v5 = vsub.f32 %v3696_v2, %v3793_v49  ;;  %v1925_v29 = vmul.f32 %v1893_v43, %v1893_v43 }
 0x284   : > { %v1973_v1 = vsel %vm1353_vm8, %v1923_v47, 0.0  ;;  %v1896_v7 = vsub.f32 %v3732_v17, %v3793_v49  ;;  %v1926_v22 = vmul.f32 %v1894_v54, %v1894_v54  ;;  %v1975_v56 = vsel %vm1353_vm8, %v1924_v48, 0.0 }
 0x285   : > { %v1952_v39 = vadd.f32 %v1951_v60, %v1950_v53  ;;  %v1897_v2 = vsub.f32 %v3740_v26, %v3793_v49  ;;  %v1927_v60 = vmul.f32 %v1895_v5, %v1895_v5  ;;  %v1898_v36 = vsub.f32 %v3730_v44, %v3793_v49 }
 0x286   : > { %v1979_v26 = vsel %vm1353_vm8, %v1926_v22, 0.0 }
 0x287   : > { %v1954_v32 = vadd.f32 %v1953_v42, %v1952_v39  ;;  %v1977_v39 = vsel %vm1353_vm8, %v1925_v29, 0.0  ;;  %v1928_v42 = vmul.f32 %v1896_v7, %v1896_v7 }
 0x289   : > { %v1956_v21 = vadd.f32 %v1955_v40, %v1954_v32 }
 0x28b   : > { %v1958_v41 = vadd.f32 %v1957_v27, %v1956_v21 }
 0x28d   : > { %v1960_v4 = vadd.f32 %v1959_v12, %v1958_v41 }
 0x28f   : > { %v1962_v51 = vadd.f32 %v1961_v46, %v1960_v4 }
 0x291   : > { %v1964_v55 = vadd.f32 %v1963_v45, %v1962_v51 }
 0x293   : > { %v1966_v58 = vadd.f32 %v1965_v25, %v1964_v55 }
 0x295   : > { %v1968_v59 = vadd.f32 %v1967_v63, %v1966_v58 }
 0x297   : > { %v1970_v19 = vadd.f32 %v1969_v14, %v1968_v59 }
 0x299   : > { %v1972_v6 = vadd.f32 %v1971_v23, %v1970_v19 }
 0x29b   : > { %v1974_v0 = vadd.f32 %v1973_v1, %v1972_v6 }
 0x29d   : > { %v1976_v20 = vadd.f32 %v1975_v56, %v1974_v0 }
 0x29f   : > { %v1978_v28 = vadd.f32 %v1977_v39, %v1976_v20 }
 0x2a1   : > { %v1980_v32 = vadd.f32 %v1979_v26, %v1978_v28 }
 0x2a7   : > { %v2512_v53 = vpop.trf.xlu0 }
 0x2a8   : > { %v2516_v62 = vunpack.i.h.bf16 %v2512_v53  ;;  %v2513_v37 = vunpack.i.l.bf16 %v2512_v53 }
 0x2aa   : > { %v2344_v17 = vpack.c.bf16 %v2516_v62, %v2513_v37 }
 0x2ac   : > { %2081 = vst [vmem:[%s196_s4] sm:$0xff] %v2344_v17 }
 0x2ad   : > { %2551 = shalt.err (!%p2548_p5)
}
 0x2ae   : > { %s2552_s21 = scalar_lea.hbm %s3877_s8, 128  ;;  %s2556_s27 = scalar_lea.hbm %s3973_s2, 256 }
 0x2af   : > { %p2553_p6 = scmp.ne.s32.totalorder %s3877_s8, %s2552_s21  ;;  %p2557_p10 = scmp.lt.s32.totalorder %s3877_s8, %s3973_s2 }
 0x2b0   : > { %p2558_p11 = scmp.lt.s32.totalorder %s2556_s27, %s2552_s21 }
 0x2b1   : > { %p2554_p7 = pnand %p2553_p6, %p2716_p4 }
 0x2b2   : > { %p2559_p12 = por %p2558_p11, %p2557_p10 }
 0x2b3   : > { %p2555_p9 = pneg %p2554_p7 }
 0x2b5   : > { %p2560_p13 = pnand %p2559_p12, %p2555_p9 }
 0x2b7   : > { %2563 = shalt.err (!%p2560_p13)
}
 0x2b8   : > { %2412 = dma.vmem_to_hbm [thread:$0]  (%p2716_p4), %s3879_s5, 128, %s3877_s8, %s2083_s9   ;;  %v1899_v44 = vsub.f32 %v3738_v3, %v3793_v49  ;;  %v1929_v16 = vmul.f32 %v1897_v2, %v1897_v2  ;;  %v1981_v38 = vsel %vm1353_vm8, %v1927_v60, 0.0  ;;  %v1900_v21 = vsub.f32 %v3766_v8, %v3793_v49 }
 0x2b9   : > { %v1982_v40 = vadd.f32 %v1981_v38, %v1980_v32  ;;  %v1930_v35 = vmul.f32 %v1898_v36, %v1898_v36  ;;  %v1983_v31 = vsel %vm1353_vm8, %v1928_v42, 0.0  ;;  %v1901_v41 = vsub.f32 %v3776_v34, %v3793_v49  ;;  %s2243_s4 = sshll.u32 %s3852_s28, 1  ;;  %s2341_s5 = sshll.u32 %s2636_s15, 5 }
 0x2ba   : > { %v1931_v24 = vmul.f32 %v1899_v44, %v1899_v44  ;;  %v1985_v30 = vsel %vm1353_vm8, %v1929_v16, 0.0  ;;  %v1902_v3 = vsub.f32 %v3764_v18, %v3793_v49  ;;  %v1932_v4 = vmul.f32 %v1900_v21, %v1900_v21  ;;  %s203_s6 = scalar_lea.vmem [#allocation4], %s2243_s4  ;;  %s3929_s10 = scalar_lea.hbm %s3974_s3, %s2341_s5 }
 0x2bb   : > { %v1984_v27 = vadd.f32 %v1983_v31, %v1982_v40  ;;  %v1987_v50 = vsel %vm1353_vm8, %v1930_v35, 0.0  ;;  %v1903_v8 = vsub.f32 %v3774_v52, %v3793_v49  ;;  %v1933_v46 = vmul.f32 %v1901_v41, %v1901_v41  ;;  %s2118_s7 = sshll.u32 %s203_s6, 4  ;;  %s2088_s11 = scalar_lea.sflag [#allocation5], %s3852_s28  ;;  %s2119_s7 = int_to_ptr.vmem [resolvable:$true] %s2118_s7 }
 0x2bc   : > { %v1989_v51 = vsel %vm1353_vm8, %v1931_v24, 0.0  ;;  %v1934_v34 = vmul.f32 %v1902_v3, %v1902_v3  ;;  %v1991_v57 = vsel %vm1353_vm8, %v1932_v4, 0.0  ;;  %vm2005_vm0 = vcmask 1040384   ;;  %s2564_s18 = scalar_lea.vmem %s2119_s7, 32  ;;  %s2655_s15 = smov [#allocation4]  }
 0x2bd   : > { %v1986_v12 = vadd.f32 %v1985_v30, %v1984_v27  ;;  %v1935_v55 = vmul.f32 %v1903_v8, %v1903_v8  ;;  %v1993_v18 = vsel %vm1353_vm8, %v1933_v46, 0.0  ;;  %vm2007_vm1 = vcmask 58368   ;;  %p2565_p0 = scmp.ne.s32.totalorder %s2119_s7, %s2564_s18  ;;  %s2568_s19 = sshll.u32 %s2655_s15, 4  ;;  %s2569_s19 = int_to_ptr.vmem [resolvable:$false] %s2568_s19 }
 0x2be   : > { %v1995_v11 = vsel %vm1353_vm8, %v1934_v34, 0.0  ;;  %s2570_s21 = scalar_lea.vmem %s2569_s19, 64  ;;  %p2571_p3 = scmp.lt.s32.totalorder %s2119_s7, %s2569_s19 }
 0x2bf   : > { %v1988_v61 = vadd.f32 %v1987_v50, %v1986_v12  ;;  %v1997_v13 = vsel %vm1353_vm8, %v1935_v55, 0.0  ;;  %p2566_p1 = pnand %p2565_p0, %p2716_p4  ;;  %p2572_p5 = scmp.lt.s32.totalorder %s2570_s21, %s2564_s18 }
 0x2c1   : > { %v1990_v10 = vadd.f32 %v1989_v51, %v1988_v61  ;;  %p2567_p2 = pneg %p2566_p1  ;;  %p2573_p6 = por %p2572_p5, %p2571_p3 }
 0x2c3   : > { %v1992_v45 = vadd.f32 %v1991_v57, %v1990_v10  ;;  %p2574_p7 = pnand %p2573_p6, %p2567_p2 }
 0x2c5   : > { %v1994_v9 = vadd.f32 %v1993_v18, %v1992_v45 }
 0x2c7   : > { %v1996_v25 = vadd.f32 %v1995_v11, %v1994_v9 }
 0x2c9   : > { %v1998_v52 = vadd.f32 %v1997_v13, %v1996_v25 }
 0x2cb   : > { %v1999_v49 = vrot.slane %v1998_v52, 4 }
 0x2cd   : > { %v2000_v58 = vadd.f32 %v1999_v49, %v1998_v52 }
 0x2cf   : > { %v2001_v15 = vrot.slane %v2000_v58, 2 }
 0x2d1   : > { %v2002_v63 = vadd.f32 %v2001_v15, %v2000_v58 }
 0x2d3   : > { %v2003_v59 = vrot.slane %v2002_v63, 1 }
 0x2d5   : > { %v2004_v43 = vadd.f32 %v2003_v59, %v2002_v63 }
 0x2d7   : > { %v2006_v47 = vsel %vm2005_vm0, %v3790_v33, %v2004_v43 }
 0x2d8   : > { %2008 = vst.msk [vmem:[%s203_s6] sm:$0x3] %vm2007_vm1, %v2006_v47 }
 0x2d9   : > { %2577 = shalt.err (!%p2574_p7)
}
 0x2da   : > { %s2578_s23 = scalar_lea.hbm %s3929_s10, 32  ;;  %s2582_s27 = scalar_lea.hbm %s3974_s3, 64 }
 0x2db   : > { %p2579_p9 = scmp.ne.s32.totalorder %s3929_s10, %s2578_s23  ;;  %p2583_p12 = scmp.lt.s32.totalorder %s3929_s10, %s3974_s3 }
 0x2dc   : > { %p2584_p13 = scmp.lt.s32.totalorder %s2582_s27, %s2578_s23 }
 0x2dd   : > { %p2580_p10 = pnand %p2579_p9, %p2716_p4 }
 0x2de   : > { %p2585_p0 = por %p2584_p13, %p2583_p12 }
 0x2df   : > { %p2581_p11 = pneg %p2580_p10 }
 0x2e1   : > { %p2586_p1 = pnand %p2585_p0, %p2581_p11 }
 0x2e3   : > { %2589 = shalt.err (!%p2586_p1)
}
 0x2e4   : > { %2413 = dma.vmem_to_hbm [thread:$0]  (%p2716_p4), %s2119_s7, 32, %s3929_s10, %s2088_s11  }
 0x2e5 PF: > { %p2423_p2 = scmp.ge.s32.totalorder %s2644_s17, 2  ;;  %s2130_s4 = sand.u32 1, %s2624_s12  }
 0x2e6   : > { %s2131_s5 = scalar_lea.sflag [#allocation3], %s2130_s4 }
 0x2e7   : > { %p2417_p3 = pnand %p2423_p2, %p2723_p8 }
 0x2e9   : > { %p2418_p5 = pneg %p2417_p3 }
 0x2eb   : > { %2615 = dma.done.wait (%p2418_p5), %s2131_s5, 128  }
 0x2ec   : > { %2617 = vsyncadd (%p2418_p5), %s2131_s5, 4294967168  ;;  %s2140_s6 = scalar_lea.sflag [#allocation5], %s2130_s4 }
 0x2ed   : > { %2619 = dma.done.wait (%p2418_p5), %s2140_s6, 32  }
 0x2ee   : > { %2621 = vsyncadd (%p2418_p5), %s2140_s6, 4294967264  ;;  %s20_s17 = sadd.s32 1, %s2644_s17   ;;  %s3981_s12 = smov %s2628_s13 }
 0x2ef   : > { %p17_p6 = scmp.ge.s32.totalorder %s20_s17, 4   ;;  %s3982_s13 = smov %s2632_s14 }
 0x2f0   : > { %s3983_s14 = smov %s2729_s25  ;;  %s3984_s15 = smov %s2640_s16 }
 0x2f1   : > { %s3985_s16 = smov %s3987_s20  ;;  %19 = sbr.rel (!%p17_p6) target bundleno = 6 (0x6), region = 83 }
 0x2f6   :  { %2145 = vsyncpa [#allocation3], 1 }
 0x2f7   :  { %2147 = vsyncpa [#allocation3 + $0x1], 1 }
 0x2f8   :  { %2148 = vsyncpa [#allocation5], 1 }
 0x2f9   :  { %2150 = vsyncpa [#allocation5 + $0x1], 1 }

</bundles_post_ra>
